<compile_context>
chip_gen: v6e
topology: v6e:2x2x1
jax: 0.10.0
libtpu: 0.0.40
codegen_flags: <defaults>
</compile_context>

<pallas_src>
import functools
import math

import jax
import jax.numpy as jnp
from jax.experimental import pallas as pl
from jax.experimental.pallas import tpu as pltpu

EPS = 1e-5
LANE = 128


def _rup(n, m=LANE):
    return ((n + m - 1) // m) * m


def _layer(act, w, p0, p1, batch_norm, compute_dtype):
    """Linear (+ optional training-mode BatchNorm1d), returns f32 [B, N].

    batch_norm=True : p0=gamma [1,N], p1=beta [1,N]; the Linear bias is omitted
                      (exactly cancelled by BN's batch-mean subtraction).
    batch_norm=False: p0=bias [1,N], p1 unused.
    """
    z = jnp.dot(act.astype(compute_dtype), w, preferred_element_type=jnp.float32)
    if batch_norm:
        mu = jnp.mean(z, axis=0, keepdims=True)
        ex2 = jnp.mean(z * z, axis=0, keepdims=True)
        var = ex2 - mu * mu                       # biased variance, f32
        scale = p0 * jax.lax.rsqrt(var + EPS)     # gamma / sqrt(var+eps)  (EUP)
        shift = p1 - mu * scale
        return z * scale + shift                  # one FMA per element
    return z + p0


def _resnet_model_kernel(
    batch_norm, compute_dtype,
    # inputs
    x_ref,
    wa_ref, pa0_ref, pa1_ref,
    wb_ref, pb0_ref, pb1_ref,
    bwa_ref, bpa0_ref, bpa1_ref,
    bwb_ref, bpb0_ref, bpb1_ref,
    wc_ref, bc_ref,
    # output
    o_ref,
    # scratch (persists across grid steps)
    h_scr, skip_scr,
):
    i = pl.program_id(0)
    nb = pl.num_programs(0)

    # ---- trunk: fc_a -> (bn) -> relu -> fc_b -> (bn) -> relu  (grid step 0) ----
    @pl.when(i == 0)
    def _trunk():
        h = _layer(x_ref[...], wa_ref[...], pa0_ref[...], pa1_ref[...],
                   batch_norm, compute_dtype)
        h = jnp.maximum(h, 0.0)
        h = _layer(h, wb_ref[...], pb0_ref[...], pb1_ref[...],
                   batch_norm, compute_dtype)
        h = jnp.maximum(h, 0.0)
        h_scr[...] = h
        skip_scr[...] = h          # outer skip, fixed after the trunk

    # ---- resnet block i (one per grid step; weights double-buffered) ----
    h = h_scr[...]
    y = _layer(h, bwa_ref[0], bpa0_ref[0], bpa1_ref[0], batch_norm, compute_dtype)
    y = jnp.maximum(y, 0.0)
    y = _layer(y, bwb_ref[0], bpb0_ref[0], bpb1_ref[0], batch_norm, compute_dtype)
    y = y + h                                      # inner residual (block skip)
    outer = (i > 0).astype(jnp.float32)            # outer skip only for blocks > 0
    h_new = jnp.maximum(y + outer * skip_scr[...], 0.0)
    h_scr[...] = h_new

    # ---- head: fc_c (last grid step) ----
    @pl.when(i == nb - 1)
    def _head():
        o_ref[...] = (jnp.dot(h_new.astype(compute_dtype), wc_ref[...],
                              preferred_element_type=jnp.float32)
                      + bc_ref[...]).astype(o_ref.dtype)


def prepare_params(p, *, batch_norm, compute_dtype):
    """Pad feature dims to multiples of 128 lanes, cast matmul weights to
    compute_dtype, and (when batch_norm) drop the pre-BN Linear biases,
    passing (gamma, beta) rows instead."""
    S, H = p["wa"].shape
    R = p["wb"].shape[1]
    O = p["wc"].shape[1]
    NB = p["blk_wa"].shape[0]
    Sp, Hp, Rp, Op = _rup(S), _rup(H), _rup(R), _rup(O)

    def pad_w(w, ip, op_):
        return jnp.pad(w, ((0, ip - w.shape[0]), (0, op_ - w.shape[1]))
                       ).astype(compute_dtype)

    def pad_row(v, dp, fill=0.0):
        v = jnp.asarray(v, jnp.float32).reshape(1, -1)
        return jnp.pad(v, ((0, 0), (0, dp - v.shape[1])), constant_values=fill)

    def rows(gamma, beta, bias, dp):
        if batch_norm:
            return pad_row(gamma, dp, 1.0), pad_row(beta, dp, 0.0)
        return pad_row(bias, dp, 0.0), jnp.zeros((1, dp), jnp.float32)

    def pad_blk_w(w):                       # [NB, R, R]
        return jnp.pad(w, ((0, 0), (0, Rp - R), (0, Rp - R))).astype(compute_dtype)

    def pad_blk_row(v, fill=0.0):           # [NB, R] -> [NB, 1, Rp]
        v = jnp.asarray(v, jnp.float32).reshape(NB, 1, R)
        return jnp.pad(v, ((0, 0), (0, 0), (0, Rp - R)), constant_values=fill)

    out = {}
    out["wa"] = pad_w(p["wa"], Sp, Hp)
    out["pa0"], out["pa1"] = rows(p.get("ga"), p.get("bta"), p["ba"], Hp)
    out["wb"] = pad_w(p["wb"], Hp, Rp)
    out["pb0"], out["pb1"] = rows(p.get("gb"), p.get("btb"), p["bb"], Rp)

    out["bwa"] = pad_blk_w(p["blk_wa"])
    out["bwb"] = pad_blk_w(p["blk_wb"])
    if batch_norm:
        out["bpa0"] = pad_blk_row(p["blk_ga"], 1.0)
        out["bpa1"] = pad_blk_row(p["blk_bta"], 0.0)
        out["bpb0"] = pad_blk_row(p["blk_gb"], 1.0)
        out["bpb1"] = pad_blk_row(p["blk_btb"], 0.0)
    else:
        zeros = jnp.zeros((NB, 1, Rp), jnp.float32)
        out["bpa0"] = pad_blk_row(p["blk_ba"], 0.0)
        out["bpa1"] = zeros
        out["bpb0"] = pad_blk_row(p["blk_bb"], 0.0)
        out["bpb1"] = zeros

    out["wc"] = pad_w(p["wc"], Rp, Op)
    out["bc"] = pad_row(p["bc"], Op, 0.0)
    dims = (S, H, R, O, Sp, Hp, Rp, Op, NB)
    return out, dims


def resnet_model_forward(x, padded, dims, *, batch_norm):
    S, H, R, O, Sp, Hp, Rp, Op, NB = dims
    assert NB >= 1, "num_resnet_blocks == 0 not supported by this kernel"
    B = x.shape[0]
    compute_dtype = padded["wa"].dtype

    # Pad input features to a lane multiple; cast activations for the MXU.
    xp = jnp.pad(x, ((0, 0), (0, Sp - S))).astype(compute_dtype)

    def const_spec(shape):                    # resident across all grid steps
        return pl.BlockSpec(shape, lambda i: (0,) * len(shape))

    def block_spec(shape):                    # one resnet block's slice per step
        return pl.BlockSpec(shape, lambda i: (i, 0, 0))

    in_specs = [
        const_spec((B, Sp)),
        const_spec((Sp, Hp)), const_spec((1, Hp)), const_spec((1, Hp)),
        const_spec((Hp, Rp)), const_spec((1, Rp)), const_spec((1, Rp)),
        block_spec((1, Rp, Rp)), block_spec((1, 1, Rp)), block_spec((1, 1, Rp)),
        block_spec((1, Rp, Rp)), block_spec((1, 1, Rp)), block_spec((1, 1, Rp)),
        const_spec((Rp, Op)), const_spec((1, Op)),
    ]

    args = (
        xp,
        padded["wa"], padded["pa0"], padded["pa1"],
        padded["wb"], padded["pb0"], padded["pb1"],
        padded["bwa"], padded["bpa0"], padded["bpa1"],
        padded["bwb"], padded["bpb0"], padded["bpb1"],
        padded["wc"], padded["bc"],
    )

    # Cost estimate (matmul FLOPs, BN rsqrt count, bytes moved).
    flops = 2 * B * (Sp * Hp + Hp * Rp + 2 * NB * Rp * Rp + Rp * Op)
    transc = (Hp + Rp + 2 * NB * Rp) if batch_norm else 0
    out_bytes = B * Op * 4
    bytes_acc = sum(int(a.nbytes) for a in args) + out_bytes

    # VMEM budget ~= 2x (double-buffered) everything resident + scratch.
    blk_step_bytes = sum(int(padded[k].nbytes) for k in
                         ("bwa", "bwb", "bpa0", "bpa1", "bpb0", "bpb1")) // NB
    const_bytes = int(xp.nbytes) + out_bytes + sum(
        int(padded[k].nbytes) for k in
        ("wa", "pa0", "pa1", "wb", "pb0", "pb1", "wc", "bc"))
    scratch_bytes = 2 * B * Rp * 4
    resident = 2 * (const_bytes + blk_step_bytes) + scratch_bytes
    vmem_limit = int(max(16 * 2**20, min(64 * 2**20, 2 * resident)))

    grid_spec = pltpu.PrefetchScalarGridSpec(
        num_scalar_prefetch=0,
        grid=(NB,),
        in_specs=in_specs,
        out_specs=pl.BlockSpec((B, Op), lambda i: (0, 0)),
        scratch_shapes=[pltpu.VMEM((B, Rp), jnp.float32),
                        pltpu.VMEM((B, Rp), jnp.float32)],
    )

    kernel = functools.partial(_resnet_model_kernel, batch_norm, compute_dtype)
    out_p = pl.pallas_call(
        kernel,
        out_shape=jax.ShapeDtypeStruct((B, Op), jnp.float32),
        grid_spec=grid_spec,
        compiler_params=pltpu.CompilerParams(
            dimension_semantics=("arbitrary",),        # block chain is sequential
            vmem_limit_bytes=vmem_limit),
        cost_estimate=pl.CostEstimate(
            flops=flops, transcendentals=transc, bytes_accessed=bytes_acc),
    )(*args)
    return out_p[:, :O]


def init_params(key, state_dim, hidden_dim, resnet_dim, num_blocks, out_dim):
    """Deterministic synthetic parameters. Linear weights stored [in, out]."""
    keys = jax.random.split(key, 5 + 4 * num_blocks)
    k_iter = iter(keys)

    def lin(fan_in, fan_out):
        k = next(k_iter)
        bound = 1.0 / math.sqrt(fan_in)
        kw, kb = jax.random.split(k)
        w = jax.random.uniform(kw, (fan_in, fan_out), jnp.float32, -bound, bound)
        b = jax.random.uniform(kb, (fan_out,), jnp.float32, -bound, bound)
        return w, b

    def bn(dim):
        k = next(k_iter)
        kg, kb = jax.random.split(k)
        g = 1.0 + 0.1 * jax.random.normal(kg, (dim,), jnp.float32)
        b = 0.1 * jax.random.normal(kb, (dim,), jnp.float32)
        return g, b

    wa, ba = lin(state_dim, hidden_dim)
    ga, bta = bn(hidden_dim)
    wb, bb = lin(hidden_dim, resnet_dim)
    gb, btb = bn(resnet_dim)

    blk = {k: [] for k in ("blk_wa", "blk_ba", "blk_ga", "blk_bta",
                           "blk_wb", "blk_bb", "blk_gb", "blk_btb")}
    for _ in range(num_blocks):
        w1, b1 = lin(resnet_dim, resnet_dim)
        g1, t1 = bn(resnet_dim)
        w2, b2 = lin(resnet_dim, resnet_dim)
        g2, t2 = bn(resnet_dim)
        blk["blk_wa"].append(w1); blk["blk_ba"].append(b1)
        blk["blk_ga"].append(g1); blk["blk_bta"].append(t1)
        blk["blk_wb"].append(w2); blk["blk_bb"].append(b2)
        blk["blk_gb"].append(g2); blk["blk_btb"].append(t2)

    p = dict(wa=wa, ba=ba, ga=ga, bta=bta, wb=wb, bb=bb, gb=gb, btb=btb,
             wc=None, bc=None)
    p["wc"], p["bc"] = lin(resnet_dim, out_dim)
    p.update({k: jnp.stack(v) for k, v in blk.items()})
    return p


def reference_forward(x, p, *, num_blocks, batch_norm, compute_dtype=jnp.float32):
    """Pure-JAX reference mirroring torch semantics (training-mode BN, biases
    kept).  compute_dtype only quantizes the matmul operands (bf16 check)."""
    def mm(a, w):
        return jnp.dot(a.astype(compute_dtype), w.astype(compute_dtype),
                       preferred_element_type=jnp.float32)

    def bn(h, g, b):
        mu = jnp.mean(h, axis=0, keepdims=True)
        var = jnp.mean((h - mu) ** 2, axis=0, keepdims=True)
        return (h - mu) / jnp.sqrt(var + EPS) * g + b

    h = mm(x, p["wa"]) + p["ba"]
    if batch_norm:
        h = bn(h, p["ga"], p["bta"])
    h = jax.nn.relu(h)
    h = mm(h, p["wb"]) + p["bb"]
    if batch_norm:
        h = bn(h, p["gb"], p["btb"])
    h = jax.nn.relu(h)
    skip = h
    for i in range(num_blocks):
        y = mm(h, p["blk_wa"][i]) + p["blk_ba"][i]
        if batch_norm:
            y = bn(y, p["blk_ga"][i], p["blk_bta"][i])
        y = jax.nn.relu(y)
        y = mm(y, p["blk_wb"][i]) + p["blk_bb"][i]
        if batch_norm:
            y = bn(y, p["blk_gb"][i], p["blk_btb"][i])
        y = y + h
        h = jax.nn.relu(y) if i == 0 else jax.nn.relu(y + skip)
    return mm(h, p["wc"]) + p["bc"]


if __name__ == "__main__":
    # Small config consistent with the module (for perf, use batch >= 128/256).
    state_dim, hidden_dim, resnet_dim, out_dim = 32, 64, 128, 16
    num_blocks, batch = 2, 8

    key = jax.random.PRNGKey(0)
    kx, kp = jax.random.split(key)
    x = jax.random.normal(kx, (batch, state_dim), jnp.float32)
    params = init_params(kp, state_dim, hidden_dim, resnet_dim, num_blocks, out_dim)

    # f32 compute path: tight check vs the torch-equivalent reference (both BN modes).
    for batch_norm in (True, False):
        padded32, dims = prepare_params(params, batch_norm=batch_norm,
                                        compute_dtype=jnp.float32)
        out32 = resnet_model_forward(x, padded32, dims, batch_norm=batch_norm)
        out32 = jax.block_until_ready(out32)
        ref32 = reference_forward(x, params, num_blocks=num_blocks,
                                  batch_norm=batch_norm)
        assert out32.shape == (batch, out_dim)
        err32 = float(jnp.max(jnp.abs(out32 - ref32)))
        assert jnp.allclose(out32, ref32, atol=1e-4, rtol=1e-4), \
            f"f32 mismatch (bn={batch_norm}): max abs err {err32}"

    # bf16 matmul path (MXU-native on v6e/v7x), checked against a reference that
    # applies the same bf16 operand quantization.
    padded16, dims = prepare_params(params, batch_norm=True,
                                    compute_dtype=jnp.bfloat16)
    out16 = resnet_model_forward(x, padded16, dims, batch_norm=True)
    out16 = jax.block_until_ready(out16)
    ref16 = reference_forward(x, params, num_blocks=num_blocks, batch_norm=True,
                              compute_dtype=jnp.bfloat16)
    err16 = float(jnp.max(jnp.abs(out16 - ref16)))
    assert jnp.allclose(out16, ref16, atol=2e-3, rtol=2e-3), \
        f"bf16 mismatch: max abs err {err16}"

    print("KERNEL_OK")
</pallas_src>

<mosaic_0001>
module attributes {stable_mosaic.version = 11 : i64} {
  func.func @_resnet_model_kernel(%arg0: i32, %arg1: memref<8x128xf32, #tpu.memory_space<vmem>>, %arg2: memref<128x128xf32, #tpu.memory_space<vmem>>, %arg3: memref<1x128xf32, #tpu.memory_space<vmem>>, %arg4: memref<1x128xf32, #tpu.memory_space<vmem>>, %arg5: memref<128x128xf32, #tpu.memory_space<vmem>>, %arg6: memref<1x128xf32, #tpu.memory_space<vmem>>, %arg7: memref<1x128xf32, #tpu.memory_space<vmem>>, %arg8: memref<1x128x128xf32, #tpu.memory_space<vmem>>, %arg9: memref<1x1x128xf32, #tpu.memory_space<vmem>>, %arg10: memref<1x1x128xf32, #tpu.memory_space<vmem>>, %arg11: memref<1x128x128xf32, #tpu.memory_space<vmem>>, %arg12: memref<1x1x128xf32, #tpu.memory_space<vmem>>, %arg13: memref<1x1x128xf32, #tpu.memory_space<vmem>>, %arg14: memref<128x128xf32, #tpu.memory_space<vmem>>, %arg15: memref<1x128xf32, #tpu.memory_space<vmem>>, %arg16: memref<8x128xf32, #tpu.memory_space<vmem>>, %arg17: memref<8x128xf32, #tpu.memory_space<vmem>>, %arg18: memref<8x128xf32, #tpu.memory_space<vmem>>) attributes {dimension_semantics = [#tpu.dimension_semantics<arbitrary>], iteration_bounds = array<i64: 2>, scalar_prefetch = 0 : i64, scratch_operands = 2 : i64, tpu.core_type = #tpu.core_type<tc>, window_params = [{pipeline_mode = #tpu.pipeline_mode<synchronous>, transform_indices = @transform_0, window_bounds = array<i64: 8, 128>}, {pipeline_mode = #tpu.pipeline_mode<synchronous>, transform_indices = @transform_1, window_bounds = array<i64: 128, 128>}, {pipeline_mode = #tpu.pipeline_mode<synchronous>, transform_indices = @transform_2, window_bounds = array<i64: 1, 128>}, {pipeline_mode = #tpu.pipeline_mode<synchronous>, transform_indices = @transform_3, window_bounds = array<i64: 1, 128>}, {pipeline_mode = #tpu.pipeline_mode<synchronous>, transform_indices = @transform_4, window_bounds = array<i64: 128, 128>}, {pipeline_mode = #tpu.pipeline_mode<synchronous>, transform_indices = @transform_5, window_bounds = array<i64: 1, 128>}, {pipeline_mode = #tpu.pipeline_mode<synchronous>, transform_indices = @transform_6, window_bounds = array<i64: 1, 128>}, {transform_indices = @transform_7, window_bounds = array<i64: 1, 128, 128>}, {transform_indices = @transform_8, window_bounds = array<i64: 1, 1, 128>}, {transform_indices = @transform_9, window_bounds = array<i64: 1, 1, 128>}, {transform_indices = @transform_10, window_bounds = array<i64: 1, 128, 128>}, {transform_indices = @transform_11, window_bounds = array<i64: 1, 1, 128>}, {transform_indices = @transform_12, window_bounds = array<i64: 1, 1, 128>}, {pipeline_mode = #tpu.pipeline_mode<synchronous>, transform_indices = @transform_13, window_bounds = array<i64: 128, 128>}, {pipeline_mode = #tpu.pipeline_mode<synchronous>, transform_indices = @transform_14, window_bounds = array<i64: 1, 128>}, {pipeline_mode = #tpu.pipeline_mode<synchronous>, transform_indices = @transform_15, window_bounds = array<i64: 8, 128>}]} {
    %c0_i32 = arith.constant 0 : i32
    %0 = arith.cmpi eq, %arg0, %c0_i32 : i32
    %1 = arith.extui %0 : i1 to i32
    %c0_i32_0 = arith.constant 0 : i32
    %2 = arith.cmpi ne, %1, %c0_i32_0 : i32
    scf.if %2 {
      %c0_39 = arith.constant 0 : index
      %c0_40 = arith.constant 0 : index
      %76 = vector.load %arg1[%c0_39, %c0_40] : memref<8x128xf32, #tpu.memory_space<vmem>>, vector<8x128xf32>
      %c0_41 = arith.constant 0 : index
      %c0_42 = arith.constant 0 : index
      %77 = vector.load %arg2[%c0_41, %c0_42] : memref<128x128xf32, #tpu.memory_space<vmem>>, vector<128x128xf32>
      %c0_43 = arith.constant 0 : index
      %c0_44 = arith.constant 0 : index
      %78 = vector.load %arg3[%c0_43, %c0_44] : memref<1x128xf32, #tpu.memory_space<vmem>>, vector<1x128xf32>
      %c0_45 = arith.constant 0 : index
      %c0_46 = arith.constant 0 : index
      %79 = vector.load %arg4[%c0_45, %c0_46] : memref<1x128xf32, #tpu.memory_space<vmem>>, vector<1x128xf32>
      %cst_47 = arith.constant dense<0.000000e+00> : vector<8x128xf32>
      %80 = tpu.matmul %76, %77, %cst_47 {dimension_numbers = #tpu.dot_dimension_numbers<[1], [0], [0], [1], [0, 0, 1, 1], [], []>} : vector<8x128xf32>, vector<128x128xf32>, vector<8x128xf32> -> vector<8x128xf32>
      %cst_48 = arith.constant dense<0.000000e+00> : vector<128xf32>
      %81 = vector.multi_reduction <add>, %80, %cst_48 [0] : vector<8x128xf32> to vector<128xf32>
      %82 = vector.shape_cast %81 : vector<128xf32> to vector<1x128xf32>
      %cst_49 = arith.constant 8.000000e+00 : f32
      %83 = vector.broadcast %cst_49 : f32 to vector<1x128xf32>
      %84 = arith.divf %82, %83 : vector<1x128xf32>
      %85 = arith.mulf %80, %80 : vector<8x128xf32>
      %cst_50 = arith.constant dense<0.000000e+00> : vector<128xf32>
      %86 = vector.multi_reduction <add>, %85, %cst_50 [0] : vector<8x128xf32> to vector<128xf32>
      %87 = vector.shape_cast %86 : vector<128xf32> to vector<1x128xf32>
      %cst_51 = arith.constant 8.000000e+00 : f32
      %88 = vector.broadcast %cst_51 : f32 to vector<1x128xf32>
      %89 = arith.divf %87, %88 : vector<1x128xf32>
      %90 = arith.mulf %84, %84 : vector<1x128xf32>
      %91 = arith.subf %89, %90 : vector<1x128xf32>
      %cst_52 = arith.constant 9.99999974E-6 : f32
      %92 = vector.broadcast %cst_52 : f32 to vector<1x128xf32>
      %93 = arith.addf %91, %92 : vector<1x128xf32>
      %94 = math.rsqrt %93 : vector<1x128xf32>
      %95 = arith.mulf %78, %94 : vector<1x128xf32>
      %96 = arith.mulf %84, %95 : vector<1x128xf32>
      %97 = arith.subf %79, %96 : vector<1x128xf32>
      %98 = vector.broadcast %95 : vector<1x128xf32> to vector<8x128xf32>
      %99 = arith.mulf %80, %98 : vector<8x128xf32>
      %100 = vector.broadcast %97 : vector<1x128xf32> to vector<8x128xf32>
      %101 = arith.addf %99, %100 : vector<8x128xf32>
      %cst_53 = arith.constant 0.000000e+00 : f32
      %102 = vector.broadcast %cst_53 : f32 to vector<8x128xf32>
      %103 = arith.maximumf %101, %102 : vector<8x128xf32>
      %c0_54 = arith.constant 0 : index
      %c0_55 = arith.constant 0 : index
      %104 = vector.load %arg5[%c0_54, %c0_55] : memref<128x128xf32, #tpu.memory_space<vmem>>, vector<128x128xf32>
      %c0_56 = arith.constant 0 : index
      %c0_57 = arith.constant 0 : index
      %105 = vector.load %arg6[%c0_56, %c0_57] : memref<1x128xf32, #tpu.memory_space<vmem>>, vector<1x128xf32>
      %c0_58 = arith.constant 0 : index
      %c0_59 = arith.constant 0 : index
      %106 = vector.load %arg7[%c0_58, %c0_59] : memref<1x128xf32, #tpu.memory_space<vmem>>, vector<1x128xf32>
      %cst_60 = arith.constant dense<0.000000e+00> : vector<8x128xf32>
      %107 = tpu.matmul %103, %104, %cst_60 {dimension_numbers = #tpu.dot_dimension_numbers<[1], [0], [0], [1], [0, 0, 1, 1], [], []>} : vector<8x128xf32>, vector<128x128xf32>, vector<8x128xf32> -> vector<8x128xf32>
      %cst_61 = arith.constant dense<0.000000e+00> : vector<128xf32>
      %108 = vector.multi_reduction <add>, %107, %cst_61 [0] : vector<8x128xf32> to vector<128xf32>
      %109 = vector.shape_cast %108 : vector<128xf32> to vector<1x128xf32>
      %cst_62 = arith.constant 8.000000e+00 : f32
      %110 = vector.broadcast %cst_62 : f32 to vector<1x128xf32>
      %111 = arith.divf %109, %110 : vector<1x128xf32>
      %112 = arith.mulf %107, %107 : vector<8x128xf32>
      %cst_63 = arith.constant dense<0.000000e+00> : vector<128xf32>
      %113 = vector.multi_reduction <add>, %112, %cst_63 [0] : vector<8x128xf32> to vector<128xf32>
      %114 = vector.shape_cast %113 : vector<128xf32> to vector<1x128xf32>
      %cst_64 = arith.constant 8.000000e+00 : f32
      %115 = vector.broadcast %cst_64 : f32 to vector<1x128xf32>
      %116 = arith.divf %114, %115 : vector<1x128xf32>
      %117 = arith.mulf %111, %111 : vector<1x128xf32>
      %118 = arith.subf %116, %117 : vector<1x128xf32>
      %cst_65 = arith.constant 9.99999974E-6 : f32
      %119 = vector.broadcast %cst_65 : f32 to vector<1x128xf32>
      %120 = arith.addf %118, %119 : vector<1x128xf32>
      %121 = math.rsqrt %120 : vector<1x128xf32>
      %122 = arith.mulf %105, %121 : vector<1x128xf32>
      %123 = arith.mulf %111, %122 : vector<1x128xf32>
      %124 = arith.subf %106, %123 : vector<1x128xf32>
      %125 = vector.broadcast %122 : vector<1x128xf32> to vector<8x128xf32>
      %126 = arith.mulf %107, %125 : vector<8x128xf32>
      %127 = vector.broadcast %124 : vector<1x128xf32> to vector<8x128xf32>
      %128 = arith.addf %126, %127 : vector<8x128xf32>
      %cst_66 = arith.constant 0.000000e+00 : f32
      %129 = vector.broadcast %cst_66 : f32 to vector<8x128xf32>
      %130 = arith.maximumf %128, %129 : vector<8x128xf32>
      %c0_67 = arith.constant 0 : index
      %c0_68 = arith.constant 0 : index
      %131 = vector.load %arg17[%c0_67, %c0_68] : memref<8x128xf32, #tpu.memory_space<vmem>>, vector<8x128xf32>
      tpu.vector_store %arg17[%c0_67, %c0_68], %130 {strides = array<i32>} : memref<8x128xf32, #tpu.memory_space<vmem>>, vector<8x128xf32>,
      %c0_69 = arith.constant 0 : index
      %c0_70 = arith.constant 0 : index
      %132 = vector.load %arg18[%c0_69, %c0_70] : memref<8x128xf32, #tpu.memory_space<vmem>>, vector<8x128xf32>
      tpu.vector_store %arg18[%c0_69, %c0_70], %130 {strides = array<i32>} : memref<8x128xf32, #tpu.memory_space<vmem>>, vector<8x128xf32>,
    } else {
    }
    %c0 = arith.constant 0 : index
    %c0_1 = arith.constant 0 : index
    %3 = vector.load %arg17[%c0, %c0_1] : memref<8x128xf32, #tpu.memory_space<vmem>>, vector<8x128xf32>
    %c0_2 = arith.constant 0 : index
    %c0_3 = arith.constant 0 : index
    %c0_4 = arith.constant 0 : index
    %4 = vector.load %arg8[%c0_2, %c0_3, %c0_4] : memref<1x128x128xf32, #tpu.memory_space<vmem>>, vector<1x128x128xf32>
    %5 = vector.shape_cast %4 : vector<1x128x128xf32> to vector<128x128xf32>
    %c0_5 = arith.constant 0 : index
    %c0_6 = arith.constant 0 : index
    %c0_7 = arith.constant 0 : index
    %6 = vector.load %arg9[%c0_5, %c0_6, %c0_7] : memref<1x1x128xf32, #tpu.memory_space<vmem>>, vector<1x1x128xf32>
    %7 = vector.shape_cast %6 : vector<1x1x128xf32> to vector<1x128xf32>
    %c0_8 = arith.constant 0 : index
    %c0_9 = arith.constant 0 : index
    %c0_10 = arith.constant 0 : index
    %8 = vector.load %arg10[%c0_8, %c0_9, %c0_10] : memref<1x1x128xf32, #tpu.memory_space<vmem>>, vector<1x1x128xf32>
    %9 = vector.shape_cast %8 : vector<1x1x128xf32> to vector<1x128xf32>
    %cst = arith.constant dense<0.000000e+00> : vector<8x128xf32>
    %10 = tpu.matmul %3, %5, %cst {dimension_numbers = #tpu.dot_dimension_numbers<[1], [0], [0], [1], [0, 0, 1, 1], [], []>} : vector<8x128xf32>, vector<128x128xf32>, vector<8x128xf32> -> vector<8x128xf32>
    %cst_11 = arith.constant dense<0.000000e+00> : vector<128xf32>
    %11 = vector.multi_reduction <add>, %10, %cst_11 [0] : vector<8x128xf32> to vector<128xf32>
    %12 = vector.shape_cast %11 : vector<128xf32> to vector<1x128xf32>
    %cst_12 = arith.constant 8.000000e+00 : f32
    %13 = vector.broadcast %cst_12 : f32 to vector<1x128xf32>
    %14 = arith.divf %12, %13 : vector<1x128xf32>
    %15 = arith.mulf %10, %10 : vector<8x128xf32>
    %cst_13 = arith.constant dense<0.000000e+00> : vector<128xf32>
    %16 = vector.multi_reduction <add>, %15, %cst_13 [0] : vector<8x128xf32> to vector<128xf32>
    %17 = vector.shape_cast %16 : vector<128xf32> to vector<1x128xf32>
    %cst_14 = arith.constant 8.000000e+00 : f32
    %18 = vector.broadcast %cst_14 : f32 to vector<1x128xf32>
    %19 = arith.divf %17, %18 : vector<1x128xf32>
    %20 = arith.mulf %14, %14 : vector<1x128xf32>
    %21 = arith.subf %19, %20 : vector<1x128xf32>
    %cst_15 = arith.constant 9.99999974E-6 : f32
    %22 = vector.broadcast %cst_15 : f32 to vector<1x128xf32>
    %23 = arith.addf %21, %22 : vector<1x128xf32>
    %24 = math.rsqrt %23 : vector<1x128xf32>
    %25 = arith.mulf %7, %24 : vector<1x128xf32>
    %26 = arith.mulf %14, %25 : vector<1x128xf32>
    %27 = arith.subf %9, %26 : vector<1x128xf32>
    %28 = vector.broadcast %25 : vector<1x128xf32> to vector<8x128xf32>
    %29 = arith.mulf %10, %28 : vector<8x128xf32>
    %30 = vector.broadcast %27 : vector<1x128xf32> to vector<8x128xf32>
    %31 = arith.addf %29, %30 : vector<8x128xf32>
    %cst_16 = arith.constant 0.000000e+00 : f32
    %32 = vector.broadcast %cst_16 : f32 to vector<8x128xf32>
    %33 = arith.maximumf %31, %32 : vector<8x128xf32>
    %c0_17 = arith.constant 0 : index
    %c0_18 = arith.constant 0 : index
    %c0_19 = arith.constant 0 : index
    %34 = vector.load %arg11[%c0_17, %c0_18, %c0_19] : memref<1x128x128xf32, #tpu.memory_space<vmem>>, vector<1x128x128xf32>
    %35 = vector.shape_cast %34 : vector<1x128x128xf32> to vector<128x128xf32>
    %c0_20 = arith.constant 0 : index
    %c0_21 = arith.constant 0 : index
    %c0_22 = arith.constant 0 : index
    %36 = vector.load %arg12[%c0_20, %c0_21, %c0_22] : memref<1x1x128xf32, #tpu.memory_space<vmem>>, vector<1x1x128xf32>
    %37 = vector.shape_cast %36 : vector<1x1x128xf32> to vector<1x128xf32>
    %c0_23 = arith.constant 0 : index
    %c0_24 = arith.constant 0 : index
    %c0_25 = arith.constant 0 : index
    %38 = vector.load %arg13[%c0_23, %c0_24, %c0_25] : memref<1x1x128xf32, #tpu.memory_space<vmem>>, vector<1x1x128xf32>
    %39 = vector.shape_cast %38 : vector<1x1x128xf32> to vector<1x128xf32>
    %cst_26 = arith.constant dense<0.000000e+00> : vector<8x128xf32>
    %40 = tpu.matmul %33, %35, %cst_26 {dimension_numbers = #tpu.dot_dimension_numbers<[1], [0], [0], [1], [0, 0, 1, 1], [], []>} : vector<8x128xf32>, vector<128x128xf32>, vector<8x128xf32> -> vector<8x128xf32>
    %cst_27 = arith.constant dense<0.000000e+00> : vector<128xf32>
    %41 = vector.multi_reduction <add>, %40, %cst_27 [0] : vector<8x128xf32> to vector<128xf32>
    %42 = vector.shape_cast %41 : vector<128xf32> to vector<1x128xf32>
    %cst_28 = arith.constant 8.000000e+00 : f32
    %43 = vector.broadcast %cst_28 : f32 to vector<1x128xf32>
    %44 = arith.divf %42, %43 : vector<1x128xf32>
    %45 = arith.mulf %40, %40 : vector<8x128xf32>
    %cst_29 = arith.constant dense<0.000000e+00> : vector<128xf32>
    %46 = vector.multi_reduction <add>, %45, %cst_29 [0] : vector<8x128xf32> to vector<128xf32>
    %47 = vector.shape_cast %46 : vector<128xf32> to vector<1x128xf32>
    %cst_30 = arith.constant 8.000000e+00 : f32
    %48 = vector.broadcast %cst_30 : f32 to vector<1x128xf32>
    %49 = arith.divf %47, %48 : vector<1x128xf32>
    %50 = arith.mulf %44, %44 : vector<1x128xf32>
    %51 = arith.subf %49, %50 : vector<1x128xf32>
    %cst_31 = arith.constant 9.99999974E-6 : f32
    %52 = vector.broadcast %cst_31 : f32 to vector<1x128xf32>
    %53 = arith.addf %51, %52 : vector<1x128xf32>
    %54 = math.rsqrt %53 : vector<1x128xf32>
    %55 = arith.mulf %37, %54 : vector<1x128xf32>
    %56 = arith.mulf %44, %55 : vector<1x128xf32>
    %57 = arith.subf %39, %56 : vector<1x128xf32>
    %58 = vector.broadcast %55 : vector<1x128xf32> to vector<8x128xf32>
    %59 = arith.mulf %40, %58 : vector<8x128xf32>
    %60 = vector.broadcast %57 : vector<1x128xf32> to vector<8x128xf32>
    %61 = arith.addf %59, %60 : vector<8x128xf32>
    %62 = arith.addf %61, %3 : vector<8x128xf32>
    %c0_i32_32 = arith.constant 0 : i32
    %63 = arith.cmpi sgt, %arg0, %c0_i32_32 : i32
    %64 = arith.extui %63 : i1 to i32
    %65 = arith.sitofp %64 : i32 to f32
    %c0_33 = arith.constant 0 : index
    %c0_34 = arith.constant 0 : index
    %66 = vector.load %arg18[%c0_33, %c0_34] : memref<8x128xf32, #tpu.memory_space<vmem>>, vector<8x128xf32>
    %67 = vector.broadcast %65 : f32 to vector<8x128xf32>
    %68 = arith.mulf %67, %66 : vector<8x128xf32>
    %69 = arith.addf %62, %68 : vector<8x128xf32>
    %cst_35 = arith.constant 0.000000e+00 : f32
    %70 = vector.broadcast %cst_35 : f32 to vector<8x128xf32>
    %71 = arith.maximumf %69, %70 : vector<8x128xf32>
    %c0_36 = arith.constant 0 : index
    %c0_37 = arith.constant 0 : index
    %72 = vector.load %arg17[%c0_36, %c0_37] : memref<8x128xf32, #tpu.memory_space<vmem>>, vector<8x128xf32>
    tpu.vector_store %arg17[%c0_36, %c0_37], %71 {strides = array<i32>} : memref<8x128xf32, #tpu.memory_space<vmem>>, vector<8x128xf32>,
    %c1_i32 = arith.constant 1 : i32
    %73 = arith.cmpi eq, %arg0, %c1_i32 : i32
    %74 = arith.extui %73 : i1 to i32
    %c0_i32_38 = arith.constant 0 : i32
    %75 = arith.cmpi ne, %74, %c0_i32_38 : i32
    scf.if %75 {
      %c0_39 = arith.constant 0 : index
      %c0_40 = arith.constant 0 : index
      %76 = vector.load %arg14[%c0_39, %c0_40] : memref<128x128xf32, #tpu.memory_space<vmem>>, vector<128x128xf32>
      %cst_41 = arith.constant dense<0.000000e+00> : vector<8x128xf32>
      %77 = tpu.matmul %71, %76, %cst_41 {dimension_numbers = #tpu.dot_dimension_numbers<[1], [0], [0], [1], [0, 0, 1, 1], [], []>} : vector<8x128xf32>, vector<128x128xf32>, vector<8x128xf32> -> vector<8x128xf32>
      %c0_42 = arith.constant 0 : index
      %c0_43 = arith.constant 0 : index
      %78 = vector.load %arg15[%c0_42, %c0_43] : memref<1x128xf32, #tpu.memory_space<vmem>>, vector<1x128xf32>
      %79 = vector.broadcast %78 : vector<1x128xf32> to vector<8x128xf32>
      %80 = arith.addf %77, %79 : vector<8x128xf32>
      %c0_44 = arith.constant 0 : index
      %c0_45 = arith.constant 0 : index
      %81 = vector.load %arg16[%c0_44, %c0_45] : memref<8x128xf32, #tpu.memory_space<vmem>>, vector<8x128xf32>
      tpu.vector_store %arg16[%c0_44, %c0_45], %80 {strides = array<i32>} : memref<8x128xf32, #tpu.memory_space<vmem>>, vector<8x128xf32>,
    } else {
    }
    return
  }
  func.func @transform_0(%arg0: i32) -> (i32, i32) {
    %c0_i32 = arith.constant 0 : i32
    %c0_i32_0 = arith.constant 0 : i32
    %c0_i32_1 = arith.constant 0 : i32
    return %c0_i32, %c0_i32_0 : i32, i32
  }
  func.func @transform_1(%arg0: i32) -> (i32, i32) {
    %c0_i32 = arith.constant 0 : i32
    %c0_i32_0 = arith.constant 0 : i32
    %c0_i32_1 = arith.constant 0 : i32
    return %c0_i32, %c0_i32_0 : i32, i32
  }
  func.func @transform_2(%arg0: i32) -> (i32, i32) {
    %c0_i32 = arith.constant 0 : i32
    %c0_i32_0 = arith.constant 0 : i32
    %c0_i32_1 = arith.constant 0 : i32
    return %c0_i32, %c0_i32_0 : i32, i32
  }
  func.func @transform_3(%arg0: i32) -> (i32, i32) {
    %c0_i32 = arith.constant 0 : i32
    %c0_i32_0 = arith.constant 0 : i32
    %c0_i32_1 = arith.constant 0 : i32
    return %c0_i32, %c0_i32_0 : i32, i32
  }
  func.func @transform_4(%arg0: i32) -> (i32, i32) {
    %c0_i32 = arith.constant 0 : i32
    %c0_i32_0 = arith.constant 0 : i32
    %c0_i32_1 = arith.constant 0 : i32
    return %c0_i32, %c0_i32_0 : i32, i32
  }
  func.func @transform_5(%arg0: i32) -> (i32, i32) {
    %c0_i32 = arith.constant 0 : i32
    %c0_i32_0 = arith.constant 0 : i32
    %c0_i32_1 = arith.constant 0 : i32
    return %c0_i32, %c0_i32_0 : i32, i32
  }
  func.func @transform_6(%arg0: i32) -> (i32, i32) {
    %c0_i32 = arith.constant 0 : i32
    %c0_i32_0 = arith.constant 0 : i32
    %c0_i32_1 = arith.constant 0 : i32
    return %c0_i32, %c0_i32_0 : i32, i32
  }
  func.func @transform_7(%arg0: i32) -> (i32, i32, i32) {
    %c0_i32 = arith.constant 0 : i32
    %c0_i32_0 = arith.constant 0 : i32
    %c0_i32_1 = arith.constant 0 : i32
    return %arg0, %c0_i32, %c0_i32_0 : i32, i32, i32
  }
  func.func @transform_8(%arg0: i32) -> (i32, i32, i32) {
    %c0_i32 = arith.constant 0 : i32
    %c0_i32_0 = arith.constant 0 : i32
    %c0_i32_1 = arith.constant 0 : i32
    return %arg0, %c0_i32, %c0_i32_0 : i32, i32, i32
  }
  func.func @transform_9(%arg0: i32) -> (i32, i32, i32) {
    %c0_i32 = arith.constant 0 : i32
    %c0_i32_0 = arith.constant 0 : i32
    %c0_i32_1 = arith.constant 0 : i32
    return %arg0, %c0_i32, %c0_i32_0 : i32, i32, i32
  }
  func.func @transform_10(%arg0: i32) -> (i32, i32, i32) {
    %c0_i32 = arith.constant 0 : i32
    %c0_i32_0 = arith.constant 0 : i32
    %c0_i32_1 = arith.constant 0 : i32
    return %arg0, %c0_i32, %c0_i32_0 : i32, i32, i32
  }
  func.func @transform_11(%arg0: i32) -> (i32, i32, i32) {
    %c0_i32 = arith.constant 0 : i32
    %c0_i32_0 = arith.constant 0 : i32
    %c0_i32_1 = arith.constant 0 : i32
    return %arg0, %c0_i32, %c0_i32_0 : i32, i32, i32
  }
  func.func @transform_12(%arg0: i32) -> (i32, i32, i32) {
    %c0_i32 = arith.constant 0 : i32
    %c0_i32_0 = arith.constant 0 : i32
    %c0_i32_1 = arith.constant 0 : i32
    return %arg0, %c0_i32, %c0_i32_0 : i32, i32, i32
  }
  func.func @transform_13(%arg0: i32) -> (i32, i32) {
    %c0_i32 = arith.constant 0 : i32
    %c0_i32_0 = arith.constant 0 : i32
    %c0_i32_1 = arith.constant 0 : i32
    return %c0_i32, %c0_i32_0 : i32, i32
  }
  func.func @transform_14(%arg0: i32) -> (i32, i32) {
    %c0_i32 = arith.constant 0 : i32
    %c0_i32_0 = arith.constant 0 : i32
    %c0_i32_1 = arith.constant 0 : i32
    return %c0_i32, %c0_i32_0 : i32, i32
  }
  func.func @transform_15(%arg0: i32) -> (i32, i32) {
    %c0_i32 = arith.constant 0 : i32
    %c0_i32_0 = arith.constant 0 : i32
    %c0_i32_1 = arith.constant 0 : i32
    return %c0_i32, %c0_i32_0 : i32, i32
  }
}

</mosaic_0001>

<bundles_post_ra>
// kernel: tpu_custom_call.1
= control target key start
LH: loop header
LB: loop body
LE: loop exit
PB: predicated region body
PF: predicated region fallthrough
CT: control target
= control target key end

     0   :  { %s2683_s0 = inlined_call_operand.hbm [shape: f32[8,128], index: 0, kind: input, shape index: {}]   ;;  %s2684_s1 = inlined_call_operand.hbm [shape: f32[128,128], index: 1, kind: input, shape index: {}]   ;;  %s2685_s2 = inlined_call_operand.vmem [shape: f32[1,128], index: 2, kind: input, shape index: {}]   ;;  %s2686_s3 = inlined_call_operand.hbm [shape: f32[1,128], index: 3, kind: input, shape index: {}]   ;;  %s2687_s4 = inlined_call_operand.hbm [shape: f32[128,128], index: 4, kind: input, shape index: {}]   ;;  %s2688_s5 = inlined_call_operand.hbm [shape: f32[1,128], index: 5, kind: input, shape index: {}]   ;;  %s2689_s6 = inlined_call_operand.vmem [shape: f32[1,128], index: 6, kind: input, shape index: {}]   ;;  %s2690_s7 = inlined_call_operand.hbm [shape: f32[2,128,128], index: 7, kind: input, shape index: {}]   ;;  %s2691_s8 = inlined_call_operand.vmem [shape: f32[2,1,128], index: 8, kind: input, shape index: {}]   ;;  %s2692_s9 = inlined_call_operand.vmem [shape: f32[2,1,128], index: 9, kind: input, shape index: {}]   ;;  %s2693_s10 = inlined_call_operand.hbm [shape: f32[2,128,128], index: 10, kind: input, shape index: {}]   ;;  %s2694_s11 = inlined_call_operand.vmem [shape: f32[2,1,128], index: 11, kind: input, shape index: {}]   ;;  %s2695_s12 = inlined_call_operand.vmem [shape: f32[2,1,128], index: 12, kind: input, shape index: {}]   ;;  %s2696_s13 = inlined_call_operand.hbm [shape: f32[128,128], index: 13, kind: input, shape index: {}]   ;;  %s2697_s14 = inlined_call_operand.vmem [shape: f32[1,128], index: 14, kind: input, shape index: {}]   ;;  %s2698_s15 = inlined_call_operand.hbm [shape: f32[8,128], index: 15, kind: output, shape index: {}]  }
   0x1   :  { %2714 = sst [smem:[#allocation28_spill]] %s2683_s0 }
   0x2   :  { %2715 = sst [smem:[#allocation29_spill]] %s2684_s1 }
   0x3   :  { %2716 = sst [smem:[#allocation30_spill]] %s2685_s2 }
   0x4   :  { %2717 = sst [smem:[#allocation31_spill]] %s2687_s4 }
   0x5   :  { %2718 = sst [smem:[#allocation32_spill]] %s2689_s6 }
   0x6   :  { %2719 = sst [smem:[#allocation33_spill]] %s2697_s14 }
   0x7   :  { %2720 = sst [smem:[#allocation34_spill]] %s2698_s15 }
   0x8   :  { %20 = vsyncpa [#allocation5], 0 }
   0x9   :  { %21 = vsyncpa [#allocation8], 0 }
   0xa   :  { %22 = vsyncpa [#allocation11], 0 }
   0xb   :  { %23 = vsyncpa [#allocation14], 0 }
   0xc   :  { %25 = vsyncpa [#allocation14 + $0x1], 0 }
   0xd   :  { %26 = vsyncpa [#allocation17], 0 }
   0xe   :  { %27 = vsyncpa [#allocation6], 0  ;;  %s2276_s18 = smov 0   ;;  %s2278_s19 = smov 0  }
   0xf   :  { %s2280_s20 = smov 0   ;;  %s2282_s21 = smov 0  }
  0x10 LB: > { %2721 = sst [smem:[#allocation25_spill]] %s2173_s20  ;;  %s2179_s22 = smov [#allocation7]   ;;  %s2177_s21 = sphi %s2282_s21, %s2753_s21   ;;  %s2173_s20 = sphi %s2280_s20, %s2755_s20   ;;  %s2169_s19 = sphi %s2278_s19, %s2757_s19   ;;  %s2165_s18 = sphi %s2276_s18, %s2756_s18  }
  0x11   : > { %s427_s23 = sshll.u32 %s2179_s22, 4  ;;  %s2297_s24 = sadd.s32 4294967295, %s2177_s21   ;;  %s428_s23 = int_to_ptr.vmem [resolvable:$true] %s427_s23 }
  0x12   : > { %p1467_p0 = scmp.ge.s32.totalorder %s2177_s21, 1  ;;  %p2706_p1 = scmp.eq.s32.totalorder %s2297_s24, 0 }
  0x13   : > { %p404_p2 = scmp.lt.s32.totalorder %s2177_s21, 3  ;;  %s2180_s26 = smov [#allocation10]  }
  0x14   : > { %s454_s27 = sshll.u32 %s2180_s26, 4  ;;  %s1898_s30 = scalar_lea.vmem %s428_s23, 2048  ;;  %s455_s27 = int_to_ptr.vmem [resolvable:$true] %s454_s27 }
  0x15   : > { %p2303_p4 = pnand %p1467_p0, %p404_p2  ;;  %p1899_p8 = scmp.ne.s32.totalorder %s428_s23, %s1898_s30 }
  0x16   : > { %p1906_p11 = scmp.lt.s32.totalorder %s428_s23, %s428_s23  ;;  %p1907_p12 = scmp.lt.s32.totalorder %s1898_s30, %s1898_s30 }
  0x17   : > { %s2722_s25 = scalar_select %p2303_p4, 1, 0 }
  0x18   : > { %p1791_p5 = pneg %p2303_p4  ;;  %p1908_p13 = por %p1907_p12, %p1906_p11 }
  0x1a   : > { %p2311_p6 = pnand %p1791_p5, %p2706_p1 }
  0x1c   : > { %s2723_s28 = scalar_select %p2311_p6, 1, 0 }
  0x1d   : > { %p2317_p7 = pneg %p2311_p6 }
  0x1f   : > { %p1901_p9 = pnand %p1899_p8, %p2317_p7 }
  0x21   : > { %p1902_p10 = pneg %p1901_p9 }
  0x23   : > { %p1909_p0 = pnand %p1908_p13, %p1902_p10 }
  0x25   : > { %1912 = shalt.err (!%p1909_p0)
}
  0x26   : > { %s2699_s16 = smov 128   ;;  %s2701_s17 = smov 8  }
  0x27   : > { %s2725_s1 = sld [smem:[#allocation29_spill]]  ;;  %s1924_s15 = scalar_lea.vmem %s455_s27, 2048 }
  0x28   : > { %p1925_p2 = scmp.ne.s32.totalorder %s455_s27, %s1924_s15  ;;  %p1932_p9 = scmp.lt.s32.totalorder %s455_s27, %s455_s27 }
  0x29   : > { %p1933_p10 = scmp.lt.s32.totalorder %s1924_s15, %s1924_s15 }
  0x2a   : > { %p1927_p5 = pnand %p1925_p2, %p2317_p7 }
  0x2b   : > { %p1934_p11 = por %p1933_p10, %p1932_p9 }
  0x2c   : > { %p1928_p8 = pneg %p1927_p5 }
  0x2d   : > { %1797 = dma.hbm_to_vmem [thread:$0]  (!%p2311_p6), %s2725_s1, 2048, %s428_s23, [#allocation8], %s2699_s16, %s2699_s16, %s2701_s17  }
  0x2e   : > { %p1935_p12 = pnand %p1934_p11, %p1928_p8 }
  0x30   : > { %1938 = shalt.err (!%p1935_p12)
}
  0x31   : > { %s2726_s4 = sld [smem:[#allocation31_spill]]  ;;  %s2342_s15 = sadd.s32 1, %s2177_s21  }
  0x32   : > { %2727 = sst [smem:[#allocation26_spill]] %s2342_s15  ;;  %s187_s23 = sadd.s32 1, %s2173_s20 }
  0x33   : > { %s184_s14 = ssub.s32 %s2177_s21, %s2342_s15  ;;  %p194_p13 = scmp.ne.s32.totalorder %s2173_s20, %s2169_s19 }
  0x34   : > { %p185_p0 = scmp.eq.s32.totalorder %s184_s14, 0  ;;  %p195_p2 = scmp.eq.s32.totalorder %s2177_s21, 0 }
  0x35   : > { %p200_p5 = scmp.ne.s32.totalorder %s2169_s19, %s2165_s18  ;;  %p1823_p8 = scmp.lt.s32.totalorder %s2177_s21, 2 }
  0x36   : > { %s2354_s22 = scalar_select %p185_p0, %s2173_s20, %s187_s23  }
  0x37   : > { %1803 = dma.hbm_to_vmem [thread:$0]  (!%p2311_p6), %s2726_s4, 2048, %s455_s27, [#allocation11], %s2699_s16, %s2699_s16, %s2701_s17  }
  0x38   : > { %2728 = sst [smem:[#allocation27_spill]] %s2354_s22  ;;  %p196_p9 = por %p195_p2, %p194_p13 }
  0x39   : > { %p2358_p10 = por %p2706_p1, %p200_p5  ;;  %s498_s30 = sand.u32 1, %s2177_s21  }
  0x3a   : > { %s500_s27 = sand.u32 1, %s2173_s20   ;;  %s1497_s17 = sshll.u32 %s2177_s21, 11 }
  0x3b   : > { %s2729_s26 = scalar_select %p2358_p10, 1, 0 }
  0x3c   : > { %s1475_s16 = sshll.u32 %s500_s27, 7  ;;  %s2368_s15 = scalar_lea.hbm %s2690_s7, %s1497_s17 }
  0x3d   : > { %s502_s18 = scalar_lea.vmem [#allocation13], %s1475_s16  ;;  %p2372_p11 = pnand %p1823_p8, %p196_p9 }
  0x3e   : > { %s509_s23 = sshll.u32 %s502_s18, 4  ;;  %s2379_s21 = scalar_lea.hbm %s2693_s10, %s1497_s17  ;;  %s2370_s23 = int_to_ptr.vmem [resolvable:$true] %s509_s23 }
  0x3f   : > { %s2730_s14 = scalar_select %p2372_p11, 1, 0 }
  0x40   : > { %s535_s1 = scalar_lea.vmem [#allocation15], %s1475_s16  ;;  %s2383_s27 = scalar_lea.sflag [#allocation14], %s498_s30 }
  0x41   : > { %s2381_s4 = sshll.u32 %s535_s1, 4  ;;  %s1939_s6 = scalar_lea.hbm %s2368_s15, 2048  ;;  %s2414_s4 = int_to_ptr.vmem [resolvable:$true] %s2381_s4 }
  0x42   : > { %p1940_p12 = scmp.ne.s32.totalorder %s2368_s15, %s1939_s6  ;;  %p2711_p13 = pneg %p2372_p11 }
  0x43   : > { %s1944_s20 = scalar_lea.hbm %s2690_s7, 4096  ;;  %p1945_p5 = scmp.lt.s32.totalorder %s2368_s15, %s2690_s7 }
  0x44   : > { %p1942_p0 = pnand %p2711_p13, %p1940_p12  ;;  %p1946_p8 = scmp.lt.s32.totalorder %s1944_s20, %s1939_s6 }
  0x46   : > { %p1943_p2 = pneg %p1942_p0  ;;  %p1947_p9 = por %p1946_p8, %p1945_p5 }
  0x48   : > { %p1948_p3 = pnand %p1947_p9, %p1943_p2 }
  0x4a   : > { %1951 = shalt.err (!%p1948_p3)
}
  0x4b   : > { %s1952_s16 = scalar_lea.vmem %s2370_s23, 2048  ;;  %s2183_s2 = smov [#allocation13]  }
  0x4c   : > { %p1953_p1 = scmp.ne.s32.totalorder %s2370_s23, %s1952_s16  ;;  %s1957_s30 = sshll.u32 %s2183_s2, 4  ;;  %s1958_s30 = int_to_ptr.vmem [resolvable:$false] %s1957_s30 }
  0x4d   : > { %s1959_s1 = scalar_lea.vmem %s1958_s30, 4096  ;;  %p1960_p10 = scmp.lt.s32.totalorder %s2370_s23, %s1958_s30 }
  0x4e   : > { %p1955_p12 = pnand %p1953_p1, %p2711_p13  ;;  %p1961_p4 = scmp.lt.s32.totalorder %s1959_s1, %s1952_s16 }
  0x50   : > { %p1956_p0 = pneg %p1955_p12  ;;  %p1962_p6 = por %p1961_p4, %p1960_p10 }
  0x52   : > { %p1963_p5 = pnand %p1962_p6, %p1956_p0 }
  0x54   : > { %1966 = shalt.err (!%p1963_p5)
}
  0x55   : > { %s2731_s6 = smov 8   ;;  %s2732_s18 = smov 128  }
  0x56   : > { %1813 = dma.hbm_to_vmem [thread:$0]  (!%p2372_p11), %s2368_s15, 2048, %s2370_s23, %s2383_s27, %s2732_s18, %s2732_s18, %s2731_s6  }
  0x57   : > { %s2184_s20 = smov [#allocation4]   ;;  %s2185_s17 = smov [#allocation9]  }
  0x58   : > { %s417_s22 = sshll.u32 %s2184_s20, 4  ;;  %s444_s16 = sshll.u32 %s2185_s17, 4  ;;  %s418_s22 = int_to_ptr.vmem [resolvable:$true] %s417_s22  ;;  %s445_s16 = int_to_ptr.vmem [resolvable:$true] %s444_s16 }
  0x59   : > { %s1978_s2 = scalar_lea.vmem %s418_s22, 128  ;;  %p1986_p6 = scmp.lt.s32.totalorder %s418_s22, %s418_s22 }
  0x5a   : > { %p1979_p1 = scmp.ne.s32.totalorder %s418_s22, %s1978_s2  ;;  %p1987_p10 = scmp.lt.s32.totalorder %s1978_s2, %s1978_s2 }
  0x5c   : > { %p1981_p3 = pnand %p1979_p1, %p2317_p7  ;;  %p1988_p2 = por %p1987_p10, %p1986_p6 }
  0x5e   : > { %p1982_p4 = pneg %p1981_p3 }
  0x60   : > { %p1989_p8 = pnand %p1988_p2, %p1982_p4 }
  0x62   : > { %1992 = shalt.err (!%p1989_p8)
}
  0x63   : > { %p2733_p9 = scmp.ne.s32.totalorder %s2723_s28, 0  ;;  %s2734_s0 = sld [smem:[#allocation28_spill]] }
  0x64   : > { %s2004_s30 = scalar_lea.vmem %s445_s16, 16  ;;  %s2011_s1 = scalar_lea.vmem %s445_s16, 32 }
  0x65   : > { %p2005_p12 = scmp.ne.s32.totalorder %s445_s16, %s2004_s30  ;;  %p2012_p1 = scmp.lt.s32.totalorder %s445_s16, %s445_s16 }
  0x66   : > { %p2013_p3 = scmp.lt.s32.totalorder %s2011_s1, %s2004_s30 }
  0x67   : > { %p2007_p0 = pnand %p2005_p12, %p2317_p7 }
  0x68   : > { %p2014_p13 = por %p2013_p3, %p2012_p1 }
  0x69   : > { %1794 = dma.hbm_to_vmem [thread:$0]  (!%p2733_p9), %s2734_s0, 128, %s418_s22, [#allocation5]  }
  0x6a   : > { %p2008_p5 = pneg %p2007_p0 }
  0x6c   : > { %p2015_p6 = pnand %p2014_p13, %p2008_p5 }
  0x6e   : > { %2018 = shalt.err (!%p2015_p6)
}
  0x6f   : > { %1800 = dma.hbm_to_vmem [thread:$0]  (!%p2733_p9), %s2686_s3, 16, %s445_s16, [#allocation8]  }
  0x70   : > { %s2186_s22 = smov [#allocation12]   ;;  %s2187_s15 = smov [#allocation16]  }
  0x71   : > { %s468_s2 = sshll.u32 %s2186_s22, 4  ;;  %s481_s23 = sshll.u32 %s2187_s15, 4  ;;  %s469_s2 = int_to_ptr.vmem [resolvable:$true] %s468_s2  ;;  %s482_s23 = int_to_ptr.vmem [resolvable:$true] %s481_s23 }
  0x72   : > { %s2030_s0 = scalar_lea.vmem %s469_s2, 16  ;;  %s2037_s30 = scalar_lea.vmem %s469_s2, 32 }
  0x73   : > { %p2031_p4 = scmp.ne.s32.totalorder %s469_s2, %s2030_s0  ;;  %p2038_p13 = scmp.lt.s32.totalorder %s469_s2, %s469_s2 }
  0x74   : > { %p2039_p8 = scmp.lt.s32.totalorder %s2037_s30, %s2030_s0 }
  0x75   : > { %p2033_p10 = pnand %p2031_p4, %p2317_p7 }
  0x76   : > { %p2040_p12 = por %p2039_p8, %p2038_p13 }
  0x77   : > { %p2034_p2 = pneg %p2033_p10 }
  0x79   : > { %p2041_p0 = pnand %p2040_p12, %p2034_p2 }
  0x7b   : > { %2044 = shalt.err (!%p2041_p0)
}
  0x7c   : > { %1806 = dma.hbm_to_vmem [thread:$0]  (!%p2733_p9), %s2688_s5, 16, %s469_s2, [#allocation11]  }
  0x7d   : > { %s2056_s20 = scalar_lea.vmem %s482_s23, 2048  ;;  %p2064_p6 = scmp.lt.s32.totalorder %s482_s23, %s482_s23 }
  0x7e   : > { %p2057_p5 = scmp.ne.s32.totalorder %s482_s23, %s2056_s20  ;;  %p2065_p4 = scmp.lt.s32.totalorder %s2056_s20, %s2056_s20 }
  0x80   : > { %p2059_p1 = pnand %p2057_p5, %p2317_p7  ;;  %p2066_p10 = por %p2065_p4, %p2064_p6 }
  0x82   : > { %p2060_p3 = pneg %p2059_p1 }
  0x84   : > { %p2067_p11 = pnand %p2066_p10, %p2060_p3 }
  0x86   : > { %2070 = shalt.err (!%p2067_p11)
}
  0x87   : > { %1809 = dma.hbm_to_vmem [thread:$0]  (!%p2733_p9), %s2696_s13, 2048, %s482_s23, [#allocation17], %s2732_s18, %s2732_s18, %s2731_s6  }
  0x88   : > { %s2071_s29 = scalar_lea.hbm %s2379_s21, 2048  ;;  %p2735_p2 = scmp.ne.s32.totalorder %s2730_s14, 0 }
  0x89   : > { %p2072_p7 = scmp.ne.s32.totalorder %s2379_s21, %s2071_s29  ;;  %s2076_s28 = scalar_lea.hbm %s2693_s10, 4096 }
  0x8a   : > { %p2736_p13 = pneg %p2735_p2  ;;  %p2077_p11 = scmp.lt.s32.totalorder %s2379_s21, %s2693_s10 }
  0x8b   : > { %p2078_p0 = scmp.lt.s32.totalorder %s2076_s28, %s2071_s29 }
  0x8c   : > { %p2074_p8 = pnand %p2072_p7, %p2736_p13 }
  0x8d   : > { %p2079_p5 = por %p2078_p0, %p2077_p11 }
  0x8e   : > { %p2075_p12 = pneg %p2074_p8 }
  0x90   : > { %p2080_p1 = pnand %p2079_p5, %p2075_p12 }
  0x92   : > { %2083 = shalt.err (!%p2080_p1)
}
  0x93   : > { %s2084_s23 = scalar_lea.vmem %s2414_s4, 2048  ;;  %p2737_p3 = pmov %p2736_p13 }
  0x94   : > { %p2085_p9 = scmp.ne.s32.totalorder %s2414_s4, %s2084_s23  ;;  %s2188_s1 = smov [#allocation15]  }
  0x95   : > { %s2089_s16 = sshll.u32 %s2188_s1, 4  ;;  %s2090_s16 = int_to_ptr.vmem [resolvable:$false] %s2089_s16 }
  0x96   : > { %p2087_p6 = pnand %p2085_p9, %p2737_p3  ;;  %s2091_s20 = scalar_lea.vmem %s2090_s16, 4096 }
  0x97   : > { %p2092_p10 = scmp.lt.s32.totalorder %s2414_s4, %s2090_s16  ;;  %p2093_p7 = scmp.lt.s32.totalorder %s2091_s20, %s2084_s23 }
  0x98   : > { %p2088_p4 = pneg %p2087_p6 }
  0x99   : > { %p2094_p13 = por %p2093_p7, %p2092_p10 }
  0x9b   : > { %p2095_p8 = pnand %p2094_p13, %p2088_p4 }
  0x9d   : > { %2098 = shalt.err (!%p2095_p8)
}
  0x9e   : > { %1816 = dma.hbm_to_vmem [thread:$0]  (!%p2735_p2), %s2379_s21, 2048, %s2414_s4, %s2383_s27, %s2732_s18, %s2732_s18, %s2731_s6  }
  0x9f   : > { %p2738_p12 = scmp.ne.s32.totalorder %s2722_s25, 0 }
  0xa0   : > { %p2739_p11 = scmp.eq.s32.totalorder (!%p2738_p12), %s2297_s24, 0 }
  0xa1   : > { %566 = sbr.rel (%p2738_p12) target bundleno = 1468 (0x5bc), region = 80 }
  0xa6   : > { %2140 = dma.done.wait (%p2739_p11), [#allocation5], 128   ;;  %p2740_p0 = pmov %p2739_p11 }
  0xa8   : > { %2142 = vsyncadd (%p2740_p0), [#allocation5], 4294967168  ;;  %p2741_p5 = pmov %p2740_p0 }
  0xa9   : > { %p2742_p1 = pmov %p2740_p0 }
  0xaa   : > { %2144 = dma.done.wait (%p2741_p5), [#allocation8], 2064  }
  0xab   : > { %2146 = vsyncadd (%p2742_p1), [#allocation8], 4294965232  ;;  %p2743_p9 = pmov %p2740_p0 }
  0xac   : > { %p2744_p2 = pmov %p2740_p0 }
  0xad   : > { %2148 = dma.done.wait (%p2743_p9), [#allocation11], 2064  }
  0xae   : > { %2150 = vsyncadd (%p2744_p2), [#allocation11], 4294965232  ;;  %s588_s25 = sand.u32 1, %s2297_s24   ;;  %s590_s14 = sand.u32 1, %s2169_s19  }
  0xaf   : > { %s1487_s21 = sshll.u32 %s590_s14, 7  ;;  %s589_s4 = scalar_lea.sflag [#allocation14], %s588_s25 }
  0xb0   : > { %s2489_s27 = scalar_lea.vmem [#allocation13], %s1487_s21  ;;  %p2745_p3 = scmp.ne.s32.totalorder %s2729_s26, 0 }
  0xb2   : > { %2152 = dma.done.wait (%p2745_p3), %s589_s4, 4096  }
  0xb3   : > { %2154 = vsyncadd (%p2745_p3), %s589_s4, 4294963200  ;;  %s2495_s6 = scalar_lea.vmem [#allocation15], %s1487_s21  ;;  %p2746_p6 = pmov %p2740_p0 }
  0xb4   : > { %p2747_p4 = pmov %p2740_p0 }
  0xb5   : > { %2156 = dma.done.wait (%p2746_p6), [#allocation17], 2048  }
  0xb6   : > { %2158 = vsyncadd (%p2747_p4), [#allocation17], 4294965248  ;;  %p664_p10 = scmp.lt.s32.totalorder %s2297_s24, 1  ;;  %p2748_p7 = scmp.ne.s32.totalorder %s2297_s24, 0 }
  0xb7   : > { %s2749_s14 = sld [smem:[#allocation30_spill]] (!%p2748_p7) }
  0xb8   : > { %s2503_s18 = scalar_select %p664_p10, %s2297_s24, 1 }
  0xb9   : > { %679 = sbr.rel (%p2748_p7) target bundleno = 702 (0x2be), region = 116  ;;  %s2750_s0 = sld [smem:[#allocation32_spill]] (!%p2748_p7) }
  0xba   : > { %s666_s26 = scalar_lea.vmem %s2691_s8, %s2503_s18  ;;  %s669_s2 = scalar_lea.vmem %s2692_s9, %s2503_s18 }
  0xbb   : > { %s672_s30 = scalar_lea.vmem %s2694_s11, %s2503_s18  ;;  %s675_s16 = scalar_lea.vmem %s2695_s12, %s2503_s18 }
  0xbe   : > { %v696_v0 = vld [vmem:[#allocation7 + $0x78] sm:$0xff]  ;;  %v2189_v1 = vmov 0.0   ;;  %v695_v2 = vld [vmem:[#allocation7 + $0x70] sm:$0xff]  ;;  %vm2190_vm0 = vmmov 0   ;;  %v694_v3 = vld [vmem:[#allocation7 + $0x68] sm:$0xff]  ;;  %v793_v54 = vlaneseq }
  0xbf   : > { %1584 = vmatprep.subr.mxu0 %v2189_v1  ;;  %1616 = vmatprep.mubr.msk.f32.mxu0 %vm2190_vm0, %v2189_v1  ;;  %v693_v4 = vld [vmem:[#allocation7 + $0x60] sm:$0xff]  ;;  %v692_v5 = vld [vmem:[#allocation7 + $0x58] sm:$0xff]  ;;  %v691_v6 = vld [vmem:[#allocation7 + $0x50] sm:$0xff] }
  0xc0   : > { %1585 = vmatpush3.msra.mxu0 %v696_v0  ;;  %1619 = vmatprep.subr.mxu1 %v2189_v1  ;;  %v690_v7 = vld [vmem:[#allocation7 + $0x48] sm:$0xff]  ;;  %v689_v8 = vld [vmem:[#allocation7 + $0x40] sm:$0xff]  ;;  %v688_v9 = vld [vmem:[#allocation7 + $0x38] sm:$0xff]  ;;  %v794_v55 = vshrl.u32 %v793_v54, 7 }
  0xc1   : > { %1586 = vmatprep.subr.mxu0 %v2189_v1  ;;  %1651 = vmatprep.mubr.msk.f32.mxu1 %vm2190_vm0, %v2189_v1  ;;  %v687_v10 = vld [vmem:[#allocation7 + $0x30] sm:$0xff]  ;;  %v686_v11 = vld [vmem:[#allocation7 + $0x28] sm:$0xff]  ;;  %v685_v12 = vld [vmem:[#allocation7 + $0x20] sm:$0xff] }
  0xc2   : > { %1587 = vmatpush3.msra.mxu0 %v695_v2  ;;  %v684_v13 = vld [vmem:[#allocation7 + $0x18] sm:$0xff]  ;;  %v683_v14 = vld [vmem:[#allocation7 + $0x10] sm:$0xff]  ;;  %v682_v15 = vld [vmem:[#allocation7 + $0x8] sm:$0xff]  ;;  %v795_v57 = vsub.s32 0, %v794_v55 }
  0xc3   : > { %1588 = vmatprep.subr.mxu0 %v2189_v1  ;;  %v681_v16 = vld [vmem:[#allocation7] sm:$0xff]  ;;  %v680_v17 = vld [vmem:[#allocation4] sm:$0xff]  ;;  %v820_v20 = vld [vmem:[#allocation10 + $0x68] sm:$0xff] }
  0xc4   : > { %1589 = vmatpush3.msra.mxu0 %v694_v3  ;;  %v822_v18 = vld [vmem:[#allocation10 + $0x78] sm:$0xff]  ;;  %v821_v19 = vld [vmem:[#allocation10 + $0x70] sm:$0xff]  ;;  %v819_v21 = vld [vmem:[#allocation10 + $0x60] sm:$0xff] }
  0xc5   : > { %1590 = vmatprep.subr.mxu0 %v2189_v1  ;;  %1620 = vmatpush3.msra.mxu1 %v822_v18  ;;  %v818_v22 = vld [vmem:[#allocation10 + $0x58] sm:$0xff]  ;;  %v817_v23 = vld [vmem:[#allocation10 + $0x50] sm:$0xff]  ;;  %v816_v24 = vld [vmem:[#allocation10 + $0x48] sm:$0xff] }
  0xc6   : > { %1591 = vmatpush3.msra.mxu0 %v693_v4  ;;  %1621 = vmatprep.subr.mxu1 %v2189_v1  ;;  %v815_v25 = vld [vmem:[#allocation10 + $0x40] sm:$0xff]  ;;  %v814_v26 = vld [vmem:[#allocation10 + $0x38] sm:$0xff]  ;;  %v813_v27 = vld [vmem:[#allocation10 + $0x30] sm:$0xff] }
  0xc7   : > { %1592 = vmatprep.subr.mxu0 %v2189_v1  ;;  %1622 = vmatpush3.msra.mxu1 %v821_v19  ;;  %v812_v28 = vld [vmem:[#allocation10 + $0x28] sm:$0xff]  ;;  %v811_v29 = vld [vmem:[#allocation10 + $0x20] sm:$0xff]  ;;  %v810_v30 = vld [vmem:[#allocation10 + $0x18] sm:$0xff] }
  0xc8   : > { %1593 = vmatpush3.msra.mxu0 %v692_v5  ;;  %1623 = vmatprep.subr.mxu1 %v2189_v1  ;;  %v809_v31 = vld [vmem:[#allocation10 + $0x10] sm:$0xff]  ;;  %v808_v32 = vld [vmem:[#allocation10 + $0x8] sm:$0xff]  ;;  %v807_v33 = vld [vmem:[#allocation10] sm:$0xff] }
  0xc9   : > { %1594 = vmatprep.subr.mxu0 %v2189_v1  ;;  %1624 = vmatpush3.msra.mxu1 %v820_v20  ;;  %v697_v56 = vld [vmem:[%s2749_s14] sm:$0x1]  ;;  %v698_v60 = vld [vmem:[#allocation9] sm:$0x1] }
  0xca   : > { %1595 = vmatpush3.msra.mxu0 %v691_v6  ;;  %1625 = vmatprep.subr.mxu1 %v2189_v1 }
  0xcb   : > { %1596 = vmatprep.subr.mxu0 %v2189_v1  ;;  %1626 = vmatpush3.msra.mxu1 %v819_v21 }
  0xcc   : > { %1597 = vmatpush3.msra.mxu0 %v690_v7  ;;  %1627 = vmatprep.subr.mxu1 %v2189_v1 }
  0xcd   : > { %1598 = vmatprep.subr.mxu0 %v2189_v1  ;;  %1628 = vmatpush3.msra.mxu1 %v818_v22 }
  0xce   : > { %1599 = vmatpush3.msra.mxu0 %v689_v8  ;;  %1629 = vmatprep.subr.mxu1 %v2189_v1 }
  0xcf   : > { %1600 = vmatprep.subr.mxu0 %v2189_v1  ;;  %1630 = vmatpush3.msra.mxu1 %v817_v23 }
  0xd0   : > { %1601 = vmatpush3.msra.mxu0 %v688_v9  ;;  %1631 = vmatprep.subr.mxu1 %v2189_v1 }
  0xd1   : > { %1602 = vmatprep.subr.mxu0 %v2189_v1  ;;  %1632 = vmatpush3.msra.mxu1 %v816_v24  ;;  %v823_v24 = vld [vmem:[#allocation12] sm:$0x1] }
  0xd2   : > { %1603 = vmatpush3.msra.mxu0 %v687_v10  ;;  %1633 = vmatprep.subr.mxu1 %v2189_v1 }
  0xd3   : > { %1604 = vmatprep.subr.mxu0 %v2189_v1  ;;  %1634 = vmatpush3.msra.mxu1 %v815_v25 }
  0xd4   : > { %1605 = vmatpush3.msra.mxu0 %v686_v11  ;;  %1635 = vmatprep.subr.mxu1 %v2189_v1 }
  0xd5   : > { %1606 = vmatprep.subr.mxu0 %v2189_v1  ;;  %1636 = vmatpush3.msra.mxu1 %v814_v26 }
  0xd6   : > { %1607 = vmatpush3.msra.mxu0 %v685_v12  ;;  %1637 = vmatprep.subr.mxu1 %v2189_v1 }
  0xd7   : > { %1608 = vmatprep.subr.mxu0 %v2189_v1  ;;  %1638 = vmatpush3.msra.mxu1 %v813_v27  ;;  %v824_v27 = vld [vmem:[%s2750_s0] sm:$0x1] }
  0xd8   : > { %1609 = vmatpush3.msra.mxu0 %v684_v13  ;;  %1639 = vmatprep.subr.mxu1 %v2189_v1 }
  0xd9   : > { %1610 = vmatprep.subr.mxu0 %v2189_v1  ;;  %1640 = vmatpush3.msra.mxu1 %v812_v28 }
  0xda   : > { %1611 = vmatpush3.msra.mxu0 %v683_v14  ;;  %1641 = vmatprep.subr.mxu1 %v2189_v1 }
  0xdb   : > { %1612 = vmatprep.subr.mxu0 %v2189_v1  ;;  %1642 = vmatpush3.msra.mxu1 %v811_v29 }
  0xdc   : > { %1613 = vmatpush3.msra.mxu0 %v682_v15  ;;  %1643 = vmatprep.subr.mxu1 %v2189_v1 }
  0xdd   : > { %1614 = vmatprep.subr.mxu0 %v2189_v1  ;;  %1644 = vmatpush3.msra.mxu1 %v810_v30 }
  0xde   : > { %1615 = vmatpush3.msra.mxu0 %v681_v16  ;;  %1645 = vmatprep.subr.mxu1 %v2189_v1 }
  0xdf   : > { %1617 = vmatmul.mubr.f32.vlgmr.msra.gmra.mxu0 %v680_v17  ;;  %1646 = vmatpush3.msra.mxu1 %v809_v31 }
  0xe0   : > { %1647 = vmatprep.subr.mxu1 %v2189_v1 }
  0xe1   : > { %1648 = vmatpush3.msra.mxu1 %v808_v32 }
  0xe2   : > { %1649 = vmatprep.subr.mxu1 %v2189_v1 }
  0xe3   : > { %1650 = vmatpush3.msra.mxu1 %v807_v33 }
 0x19f   : > { %v765_v34 = vpop.f32.mrf.mxu0 }
 0x1a0   : > { %v769_v35 = vrot.slane %v765_v34, 4  ;;  %v777_v36 = vmul.f32 %v765_v34, %v765_v34 }
 0x1a1   : > { %v1618_v37 = vpop.f32.mrf.mxu0 }
 0x1a2   : > { %v770_v38 = vadd.f32 %v769_v35, %v765_v34  ;;  %v778_v39 = vrot.slane %v777_v36, 4 }
 0x1a4   : > { %v771_v40 = vrot.slane %v770_v38, 2  ;;  %v779_v41 = vadd.f32 %v778_v39, %v777_v36 }
 0x1a6   : > { %v772_v42 = vadd.f32 %v771_v40, %v770_v38  ;;  %v780_v43 = vrot.slane %v779_v41, 2 }
 0x1a8   : > { %v773_v44 = vrot.slane %v772_v42, 1  ;;  %v781_v45 = vadd.f32 %v780_v43, %v779_v41 }
 0x1aa   : > { %v774_v46 = vadd.f32 %v773_v44, %v772_v42  ;;  %v782_v47 = vrot.slane %v781_v45, 1 }
 0x1ac   : > { %v776_v48 = vmul.f32 0.125, %v774_v46  ;;  %v783_v49 = vadd.f32 %v782_v47, %v781_v45 }
 0x1ae   : > { %v784_v50 = vmul.f32 0.125, %v783_v49  ;;  %v785_v51 = vmul.f32 %v776_v48, %v776_v48 }
 0x1b0   : > { %v786_v52 = vsub.f32 %v784_v50, %v785_v51 }
 0x1b2   : > { %v787_v53 = vadd.f32 1e-05, %v786_v52 }
 0x1b4   : > { %1879 = vrsqrt.f32 %v787_v53 }
 0x1c1   : > { %v1880_v58 = vpop.eup %1879 }
 0x1c2   : > { %v789_v59 = vmul.f32 %v1880_v58, %v697_v56 }
 0x1c4   : > { %v796_v61 = vrot.slane %v789_v59, %v795_v57  ;;  %v790_v62 = vmul.f32 %v789_v59, %v776_v48 }
 0x1c6   : > { %v791_v63 = vsub.f32 %v698_v60, %v790_v62  ;;  %v798_v0 = vmul.f32 %v796_v61, %v765_v34 }
 0x1c8   : > { %v803_v1 = vrot.slane %v791_v63, %v795_v57 }
 0x1ca   : > { %v805_v2 = vadd.f32 %v803_v1, %v798_v0 }
 0x1cc   : > { %v806_v3 = vmax.f32 %v805_v2, 0.0 }
 0x1ce   : > { %1652 = vmatmul.mubr.f32.vlgmr.msra.gmra.mxu1 %v806_v3 }
 0x28e   : > { %v891_v4 = vpop.f32.mrf.mxu1 }
 0x28f   : > { %v895_v5 = vrot.slane %v891_v4, 4  ;;  %v902_v6 = vmul.f32 %v891_v4, %v891_v4 }
 0x290   : > { %v1653_v7 = vpop.f32.mrf.mxu1 }
 0x291   : > { %v896_v8 = vadd.f32 %v895_v5, %v891_v4  ;;  %v903_v9 = vrot.slane %v902_v6, 4 }
 0x293   : > { %v897_v10 = vrot.slane %v896_v8, 2  ;;  %v904_v11 = vadd.f32 %v903_v9, %v902_v6 }
 0x295   : > { %v898_v12 = vadd.f32 %v897_v10, %v896_v8  ;;  %v905_v13 = vrot.slane %v904_v11, 2 }
 0x297   : > { %v899_v14 = vrot.slane %v898_v12, 1  ;;  %v906_v15 = vadd.f32 %v905_v13, %v904_v11 }
 0x299   : > { %v900_v16 = vadd.f32 %v899_v14, %v898_v12  ;;  %v907_v17 = vrot.slane %v906_v15, 1 }
 0x29b   : > { %v901_v18 = vmul.f32 0.125, %v900_v16  ;;  %v908_v19 = vadd.f32 %v907_v17, %v906_v15 }
 0x29d   : > { %v909_v20 = vmul.f32 0.125, %v908_v19  ;;  %v910_v21 = vmul.f32 %v901_v18, %v901_v18 }
 0x29f   : > { %v911_v22 = vsub.f32 %v909_v20, %v910_v21 }
 0x2a1   : > { %v912_v23 = vadd.f32 1e-05, %v911_v22 }
 0x2a3   : > { %1881 = vrsqrt.f32 %v912_v23 }
 0x2b0   : > { %v1882_v25 = vpop.eup %1881 }
 0x2b1   : > { %v914_v26 = vmul.f32 %v1882_v25, %v823_v24 }
 0x2b3   : > { %v915_v28 = vmul.f32 %v914_v26, %v901_v18  ;;  %v921_v29 = vrot.slane %v914_v26, %v795_v57 }
 0x2b5   : > { %v916_v30 = vsub.f32 %v824_v27, %v915_v28  ;;  %v923_v31 = vmul.f32 %v921_v29, %v891_v4 }
 0x2b7   : > { %v928_v32 = vrot.slane %v916_v30, %v795_v57 }
 0x2b9   : > { %v930_v33 = vadd.f32 %v928_v32, %v923_v31 }
 0x2bb   : > { %v931_v34 = vmax.f32 %v930_v33, 0.0 }
 0x2bd   : > { %932 = vst [vmem:[#allocation2] sm:$0xff] %v931_v34  ;;  %933 = vst [vmem:[#allocation3] sm:$0xff] %v931_v34 }
 0x2be PF: > { %v950_v35 = vld [vmem:[%s2489_s27 + $0x78] sm:$0xff]  ;;  %v2191_v36 = vmov 0.0   ;;  %v949_v37 = vld [vmem:[%s2489_s27 + $0x70] sm:$0xff]  ;;  %vm2192_vm1 = vmmov 0   ;;  %v948_v38 = vld [vmem:[%s2489_s27 + $0x68] sm:$0xff]  ;;  %v1047_v25 = vlaneseq  ;;  %p1186_p13 = scmp.gt.s32.totalorder %s2297_s24, 0 }
 0x2bf   : > { %1654 = vmatprep.subr.mxu0 %v2191_v36  ;;  %1686 = vmatprep.mubr.msk.f32.mxu0 %vm2192_vm1, %v2191_v36  ;;  %v947_v39 = vld [vmem:[%s2489_s27 + $0x60] sm:$0xff]  ;;  %v946_v40 = vld [vmem:[%s2489_s27 + $0x58] sm:$0xff]  ;;  %v945_v41 = vld [vmem:[%s2489_s27 + $0x50] sm:$0xff]  ;;  %p1491_p8 = scmp.ne.s32.totalorder %s2297_s24, 1 }
 0x2c0   : > { %1655 = vmatpush3.msra.mxu0 %v950_v35  ;;  %1689 = vmatprep.subr.mxu1 %v2191_v36  ;;  %v944_v42 = vld [vmem:[%s2489_s27 + $0x48] sm:$0xff]  ;;  %v943_v43 = vld [vmem:[%s2489_s27 + $0x40] sm:$0xff]  ;;  %v942_v44 = vld [vmem:[%s2489_s27 + $0x38] sm:$0xff]  ;;  %v1048_v26 = vshrl.u32 %v1047_v25, 7  ;;  %s2751_s1 = sld [smem:[#allocation33_spill]] (!%p1491_p8) }
 0x2c1   : > { %1656 = vmatprep.subr.mxu0 %v2191_v36  ;;  %1721 = vmatprep.mubr.msk.f32.mxu1 %vm2192_vm1, %v2191_v36  ;;  %v941_v45 = vld [vmem:[%s2489_s27 + $0x30] sm:$0xff]  ;;  %v940_v46 = vld [vmem:[%s2489_s27 + $0x28] sm:$0xff]  ;;  %v939_v47 = vld [vmem:[%s2489_s27 + $0x20] sm:$0xff] }
 0x2c2   : > { %1657 = vmatpush3.msra.mxu0 %v949_v37  ;;  %v938_v48 = vld [vmem:[%s2489_s27 + $0x18] sm:$0xff]  ;;  %v937_v49 = vld [vmem:[%s2489_s27 + $0x10] sm:$0xff]  ;;  %v936_v50 = vld [vmem:[%s2489_s27 + $0x8] sm:$0xff]  ;;  %v1049_v28 = vsub.s32 0, %v1048_v26 }
 0x2c3   : > { %1658 = vmatprep.subr.mxu0 %v2191_v36  ;;  %v935_v51 = vld [vmem:[%s2489_s27] sm:$0xff]  ;;  %v1076_v53 = vld [vmem:[%s2495_s6 + $0x78] sm:$0xff]  ;;  %v1075_v54 = vld [vmem:[%s2495_s6 + $0x70] sm:$0xff] }
 0x2c4   : > { %1659 = vmatpush3.msra.mxu0 %v948_v38  ;;  %v2597_v52 = vld [vmem:[#allocation2] sm:$0xff]  ;;  %1690 = vmatpush3.msra.mxu1 %v1076_v53  ;;  %v1072_v57 = vld [vmem:[%s2495_s6 + $0x58] sm:$0xff]  ;;  %v1071_v58 = vld [vmem:[%s2495_s6 + $0x50] sm:$0xff] }
 0x2c5   : > { %1660 = vmatprep.subr.mxu0 %v2191_v36  ;;  %1691 = vmatprep.subr.mxu1 %v2191_v36  ;;  %v1074_v55 = vld [vmem:[%s2495_s6 + $0x68] sm:$0xff]  ;;  %v1073_v56 = vld [vmem:[%s2495_s6 + $0x60] sm:$0xff]  ;;  %v1068_v61 = vld [vmem:[%s2495_s6 + $0x38] sm:$0xff] }
 0x2c6   : > { %1661 = vmatpush3.msra.mxu0 %v947_v39  ;;  %1692 = vmatpush3.msra.mxu1 %v1075_v54  ;;  %v1070_v59 = vld [vmem:[%s2495_s6 + $0x48] sm:$0xff]  ;;  %v1069_v60 = vld [vmem:[%s2495_s6 + $0x40] sm:$0xff]  ;;  %v1067_v62 = vld [vmem:[%s2495_s6 + $0x30] sm:$0xff] }
 0x2c7   : > { %1662 = vmatprep.subr.mxu0 %v2191_v36  ;;  %1693 = vmatprep.subr.mxu1 %v2191_v36  ;;  %v1066_v63 = vld [vmem:[%s2495_s6 + $0x28] sm:$0xff]  ;;  %v1065_v0 = vld [vmem:[%s2495_s6 + $0x20] sm:$0xff]  ;;  %v1064_v1 = vld [vmem:[%s2495_s6 + $0x18] sm:$0xff] }
 0x2c8   : > { %1663 = vmatpush3.msra.mxu0 %v946_v40  ;;  %1694 = vmatpush3.msra.mxu1 %v1074_v55  ;;  %v1063_v2 = vld [vmem:[%s2495_s6 + $0x10] sm:$0xff]  ;;  %v1062_v3 = vld [vmem:[%s2495_s6 + $0x8] sm:$0xff]  ;;  %v1061_v4 = vld [vmem:[%s2495_s6] sm:$0xff] }
 0x2c9   : > { %1664 = vmatprep.subr.mxu0 %v2191_v36  ;;  %1695 = vmatprep.subr.mxu1 %v2191_v36  ;;  %v951_v27 = vld [vmem:[%s666_s26] sm:$0x1] }
 0x2ca   : > { %1665 = vmatpush3.msra.mxu0 %v945_v41  ;;  %1696 = vmatpush3.msra.mxu1 %v1073_v56  ;;  %v952_v31 = vld [vmem:[%s669_s2] sm:$0x1]  ;;  %s1187_s2 = scalar_select %p1186_p13, 1, 0 }
 0x2cb   : > { %1666 = vmatprep.subr.mxu0 %v2191_v36  ;;  %1697 = vmatprep.subr.mxu1 %v2191_v36 }
 0x2cc   : > { %1667 = vmatpush3.msra.mxu0 %v944_v42  ;;  %1698 = vmatpush3.msra.mxu1 %v1072_v57  ;;  %s1188_s23 = scvt.s32.f32 %s1187_s2 }
 0x2cd   : > { %1668 = vmatprep.subr.mxu0 %v2191_v36  ;;  %1699 = vmatprep.subr.mxu1 %v2191_v36 }
 0x2ce   : > { %1669 = vmatpush3.msra.mxu0 %v943_v43  ;;  %1700 = vmatpush3.msra.mxu1 %v1071_v58 }
 0x2cf   : > { %1670 = vmatprep.subr.mxu0 %v2191_v36  ;;  %1701 = vmatprep.subr.mxu1 %v2191_v36 }
 0x2d0   : > { %1671 = vmatpush3.msra.mxu0 %v942_v44  ;;  %1702 = vmatpush3.msra.mxu1 %v1070_v59 }
 0x2d1   : > { %1672 = vmatprep.subr.mxu0 %v2191_v36  ;;  %1703 = vmatprep.subr.mxu1 %v2191_v36 }
 0x2d2   : > { %1673 = vmatpush3.msra.mxu0 %v941_v45  ;;  %1704 = vmatpush3.msra.mxu1 %v1069_v60  ;;  %v1077_v60 = vld [vmem:[%s672_s30] sm:$0x1] }
 0x2d3   : > { %1674 = vmatprep.subr.mxu0 %v2191_v36  ;;  %1705 = vmatprep.subr.mxu1 %v2191_v36 }
 0x2d4   : > { %1675 = vmatpush3.msra.mxu0 %v940_v46  ;;  %1706 = vmatpush3.msra.mxu1 %v1068_v61 }
 0x2d5   : > { %1676 = vmatprep.subr.mxu0 %v2191_v36  ;;  %1707 = vmatprep.subr.mxu1 %v2191_v36 }
 0x2d6   : > { %1677 = vmatpush3.msra.mxu0 %v939_v47  ;;  %1708 = vmatpush3.msra.mxu1 %v1067_v62 }
 0x2d7   : > { %1678 = vmatprep.subr.mxu0 %v2191_v36  ;;  %1709 = vmatprep.subr.mxu1 %v2191_v36 }
 0x2d8   : > { %1679 = vmatpush3.msra.mxu0 %v938_v48  ;;  %1710 = vmatpush3.msra.mxu1 %v1066_v63  ;;  %v1078_v63 = vld [vmem:[%s675_s16] sm:$0x1] }
 0x2d9   : > { %1680 = vmatprep.subr.mxu0 %v2191_v36  ;;  %1711 = vmatprep.subr.mxu1 %v2191_v36 }
 0x2da   : > { %1681 = vmatpush3.msra.mxu0 %v937_v49  ;;  %1712 = vmatpush3.msra.mxu1 %v1065_v0 }
 0x2db   : > { %1682 = vmatprep.subr.mxu0 %v2191_v36  ;;  %1713 = vmatprep.subr.mxu1 %v2191_v36 }
 0x2dc   : > { %1683 = vmatpush3.msra.mxu0 %v936_v50  ;;  %1714 = vmatpush3.msra.mxu1 %v1064_v1 }
 0x2dd   : > { %1684 = vmatprep.subr.mxu0 %v2191_v36  ;;  %1715 = vmatprep.subr.mxu1 %v2191_v36 }
 0x2de   : > { %1685 = vmatpush3.msra.mxu0 %v935_v51  ;;  %1716 = vmatpush3.msra.mxu1 %v1063_v2 }
 0x2df   : > { %1687 = vmatmul.mubr.f32.vlgmr.msra.gmra.mxu0 %v2597_v52  ;;  %1717 = vmatprep.subr.mxu1 %v2191_v36 }
 0x2e0   : > { %1718 = vmatpush3.msra.mxu1 %v1062_v3  ;;  %v1189_v3 = vld [vmem:[#allocation3] sm:$0xff] }
 0x2e1   : > { %1719 = vmatprep.subr.mxu1 %v2191_v36 }
 0x2e2   : > { %1720 = vmatpush3.msra.mxu1 %v1061_v4  ;;  %v1190_v4 = vstv %s1188_s23 }
 0x39f   : > { %v1019_v5 = vpop.f32.mrf.mxu0 }
 0x3a0   : > { %v1023_v6 = vrot.slane %v1019_v5, 4  ;;  %v1031_v7 = vmul.f32 %v1019_v5, %v1019_v5 }
 0x3a1   : > { %v1688_v8 = vpop.f32.mrf.mxu0 }
 0x3a2   : > { %v1024_v9 = vadd.f32 %v1023_v6, %v1019_v5  ;;  %v1032_v10 = vrot.slane %v1031_v7, 4  ;;  %v1191_v8 = vmul.f32 %v1190_v4, %v1189_v3 }
 0x3a4   : > { %v1025_v11 = vrot.slane %v1024_v9, 2  ;;  %v1033_v12 = vadd.f32 %v1032_v10, %v1031_v7 }
 0x3a6   : > { %v1026_v13 = vadd.f32 %v1025_v11, %v1024_v9  ;;  %v1034_v14 = vrot.slane %v1033_v12, 2 }
 0x3a8   : > { %v1027_v15 = vrot.slane %v1026_v13, 1  ;;  %v1035_v16 = vadd.f32 %v1034_v14, %v1033_v12 }
 0x3aa   : > { %v1028_v17 = vadd.f32 %v1027_v15, %v1026_v13  ;;  %v1036_v18 = vrot.slane %v1035_v16, 1 }
 0x3ac   : > { %v1030_v19 = vmul.f32 0.125, %v1028_v17  ;;  %v1037_v20 = vadd.f32 %v1036_v18, %v1035_v16 }
 0x3ae   : > { %v1038_v21 = vmul.f32 0.125, %v1037_v20  ;;  %v1039_v22 = vmul.f32 %v1030_v19, %v1030_v19 }
 0x3b0   : > { %v1040_v23 = vsub.f32 %v1038_v21, %v1039_v22 }
 0x3b2   : > { %v1041_v24 = vadd.f32 1e-05, %v1040_v23 }
 0x3b4   : > { %1883 = vrsqrt.f32 %v1041_v24 }
 0x3c1   : > { %v1884_v29 = vpop.eup %1883 }
 0x3c2   : > { %v1043_v30 = vmul.f32 %v1884_v29, %v951_v27 }
 0x3c4   : > { %v1050_v32 = vrot.slane %v1043_v30, %v1049_v28  ;;  %v1044_v33 = vmul.f32 %v1043_v30, %v1030_v19 }
 0x3c6   : > { %v1045_v34 = vsub.f32 %v952_v31, %v1044_v33  ;;  %v1052_v35 = vmul.f32 %v1050_v32, %v1019_v5 }
 0x3c8   : > { %v1057_v36 = vrot.slane %v1045_v34, %v1049_v28 }
 0x3ca   : > { %v1059_v37 = vadd.f32 %v1057_v36, %v1052_v35 }
 0x3cc   : > { %v1060_v38 = vmax.f32 %v1059_v37, 0.0 }
 0x3ce   : > { %1722 = vmatmul.mubr.f32.vlgmr.msra.gmra.mxu1 %v1060_v38 }
 0x48e   : > { %v1145_v39 = vpop.f32.mrf.mxu1 }
 0x48f   : > { %v1149_v40 = vrot.slane %v1145_v39, 4  ;;  %v1156_v41 = vmul.f32 %v1145_v39, %v1145_v39 }
 0x490   : > { %v1723_v42 = vpop.f32.mrf.mxu1 }
 0x491   : > { %v1150_v43 = vadd.f32 %v1149_v40, %v1145_v39  ;;  %v1157_v44 = vrot.slane %v1156_v41, 4 }
 0x493   : > { %v1151_v45 = vrot.slane %v1150_v43, 2  ;;  %v1158_v46 = vadd.f32 %v1157_v44, %v1156_v41 }
 0x495   : > { %v1152_v47 = vadd.f32 %v1151_v45, %v1150_v43  ;;  %v1159_v48 = vrot.slane %v1158_v46, 2 }
 0x497   : > { %v1153_v49 = vrot.slane %v1152_v47, 1  ;;  %v1160_v50 = vadd.f32 %v1159_v48, %v1158_v46 }
 0x499   : > { %v1154_v51 = vadd.f32 %v1153_v49, %v1152_v47  ;;  %v1161_v53 = vrot.slane %v1160_v50, 1 }
 0x49b   : > { %v1155_v54 = vmul.f32 0.125, %v1154_v51  ;;  %v1162_v55 = vadd.f32 %v1161_v53, %v1160_v50 }
 0x49d   : > { %v1163_v56 = vmul.f32 0.125, %v1162_v55  ;;  %v1164_v57 = vmul.f32 %v1155_v54, %v1155_v54 }
 0x49f   : > { %v1165_v58 = vsub.f32 %v1163_v56, %v1164_v57 }
 0x4a1   : > { %v1166_v59 = vadd.f32 1e-05, %v1165_v58 }
 0x4a3   : > { %1885 = vrsqrt.f32 %v1166_v59 }
 0x4b0   : > { %v1886_v61 = vpop.eup %1885 }
 0x4b1   : > { %v1168_v62 = vmul.f32 %v1886_v61, %v1077_v60 }
 0x4b3   : > { %v1169_v0 = vmul.f32 %v1168_v62, %v1155_v54  ;;  %v1175_v1 = vrot.slane %v1168_v62, %v1049_v28 }
 0x4b5   : > { %v1170_v2 = vsub.f32 %v1078_v63, %v1169_v0  ;;  %v1177_v5 = vmul.f32 %v1175_v1, %v1145_v39 }
 0x4b7   : > { %v1182_v6 = vrot.slane %v1170_v2, %v1049_v28 }
 0x4b9   : > { %v1184_v7 = vadd.f32 %v1182_v6, %v1177_v5 }
 0x4bb   : > { %v1185_v9 = vadd.f32 %v1184_v7, %v2597_v52 }
 0x4bd   : > { %v1192_v10 = vadd.f32 %v1191_v8, %v1185_v9  ;;  %1198 = sbr.rel (%p1491_p8) target bundleno = 1447 (0x5a7), region = 120 }
 0x4bf   : > { %v1193_v11 = vmax.f32 %v1192_v10, 0.0 }
 0x4c1   : > { %1194 = vst [vmem:[#allocation2] sm:$0xff] %v1193_v11 }
 0x4c2   : > { %v1214_v12 = vld [vmem:[#allocation16 + $0x78] sm:$0xff]  ;;  %v2193_v13 = vmov 0.0   ;;  %v1213_v14 = vld [vmem:[#allocation16 + $0x70] sm:$0xff]  ;;  %vm2194_vm2 = vmmov 0   ;;  %v1212_v15 = vld [vmem:[#allocation16 + $0x68] sm:$0xff] }
 0x4c3   : > { %1724 = vmatprep.subr.mxu0 %v2193_v13  ;;  %1756 = vmatprep.mubr.msk.f32.mxu0 %vm2194_vm2, %v2193_v13  ;;  %v1211_v16 = vld [vmem:[#allocation16 + $0x60] sm:$0xff]  ;;  %v1210_v52 = vld [vmem:[#allocation16 + $0x58] sm:$0xff]  ;;  %v1209_v17 = vld [vmem:[#allocation16 + $0x50] sm:$0xff] }
 0x4c4   : > { %1725 = vmatpush3.msra.mxu0 %v1214_v12  ;;  %v1208_v18 = vld [vmem:[#allocation16 + $0x48] sm:$0xff]  ;;  %v1207_v19 = vld [vmem:[#allocation16 + $0x40] sm:$0xff]  ;;  %v1206_v20 = vld [vmem:[#allocation16 + $0x38] sm:$0xff] }
 0x4c5   : > { %1726 = vmatprep.subr.mxu0 %v2193_v13  ;;  %v1205_v21 = vld [vmem:[#allocation16 + $0x30] sm:$0xff]  ;;  %v1204_v22 = vld [vmem:[#allocation16 + $0x28] sm:$0xff]  ;;  %v1203_v23 = vld [vmem:[#allocation16 + $0x20] sm:$0xff] }
 0x4c6   : > { %1727 = vmatpush3.msra.mxu0 %v1213_v14  ;;  %v1202_v24 = vld [vmem:[#allocation16 + $0x18] sm:$0xff]  ;;  %v1201_v25 = vld [vmem:[#allocation16 + $0x10] sm:$0xff]  ;;  %v1200_v26 = vld [vmem:[#allocation16 + $0x8] sm:$0xff] }
 0x4c7   : > { %1728 = vmatprep.subr.mxu0 %v2193_v13  ;;  %v1199_v27 = vld [vmem:[#allocation16] sm:$0xff] }
 0x4c8   : > { %1729 = vmatpush3.msra.mxu0 %v1212_v15  ;;  %v1492_v28 = vld [vmem:[%s2751_s1] ss:$0 sm:$0xff] }
 0x4c9   : > { %1730 = vmatprep.subr.mxu0 %v2193_v13 }
 0x4ca   : > { %1731 = vmatpush3.msra.mxu0 %v1211_v16 }
 0x4cb   : > { %1732 = vmatprep.subr.mxu0 %v2193_v13 }
 0x4cc   : > { %1733 = vmatpush3.msra.mxu0 %v1210_v52 }
 0x4cd   : > { %1734 = vmatprep.subr.mxu0 %v2193_v13 }
 0x4ce   : > { %1735 = vmatpush3.msra.mxu0 %v1209_v17 }
 0x4cf   : > { %1736 = vmatprep.subr.mxu0 %v2193_v13 }
 0x4d0   : > { %1737 = vmatpush3.msra.mxu0 %v1208_v18 }
 0x4d1   : > { %1738 = vmatprep.subr.mxu0 %v2193_v13 }
 0x4d2   : > { %1739 = vmatpush3.msra.mxu0 %v1207_v19 }
 0x4d3   : > { %1740 = vmatprep.subr.mxu0 %v2193_v13 }
 0x4d4   : > { %1741 = vmatpush3.msra.mxu0 %v1206_v20 }
 0x4d5   : > { %1742 = vmatprep.subr.mxu0 %v2193_v13 }
 0x4d6   : > { %1743 = vmatpush3.msra.mxu0 %v1205_v21 }
 0x4d7   : > { %1744 = vmatprep.subr.mxu0 %v2193_v13 }
 0x4d8   : > { %1745 = vmatpush3.msra.mxu0 %v1204_v22 }
 0x4d9   : > { %1746 = vmatprep.subr.mxu0 %v2193_v13 }
 0x4da   : > { %1747 = vmatpush3.msra.mxu0 %v1203_v23 }
 0x4db   : > { %1748 = vmatprep.subr.mxu0 %v2193_v13 }
 0x4dc   : > { %1749 = vmatpush3.msra.mxu0 %v1202_v24 }
 0x4dd   : > { %1750 = vmatprep.subr.mxu0 %v2193_v13 }
 0x4de   : > { %1751 = vmatpush3.msra.mxu0 %v1201_v25 }
 0x4df   : > { %1752 = vmatprep.subr.mxu0 %v2193_v13 }
 0x4e0   : > { %1753 = vmatpush3.msra.mxu0 %v1200_v26 }
 0x4e1   : > { %1754 = vmatprep.subr.mxu0 %v2193_v13 }
 0x4e2   : > { %1755 = vmatpush3.msra.mxu0 %v1199_v27 }
 0x4e3   : > { %1757 = vmatmul.mubr.f32.vlgmr.msra.gmra.mxu0 %v1193_v11 }
 0x5a3   : > { %v1288_v29 = vpop.f32.mrf.mxu0 }
 0x5a4   : > { %v1289_v30 = vadd.f32 %v1492_v28, %v1288_v29 }
 0x5a5   : > { %v1758_v31 = vpop.f32.mrf.mxu0 }
 0x5a6   : > { %1292 = vst [vmem:[#allocation18] sm:$0xff] %v1289_v30 }
 0x5a7 PF: > { %p1830_p12 = scmp.eq.s32.totalorder %s2297_s24, 1  ;;  %s2195_s16 = smov [#allocation18]  }
 0x5a8   : > { %s1300_s20 = sshll.u32 %s2195_s16, 4  ;;  %s1301_s20 = int_to_ptr.vmem [resolvable:$true] %s1300_s20 }
 0x5a9   : > { %s2099_s25 = scalar_lea.vmem %s1301_s20, 128  ;;  %p2106_p1 = scmp.lt.s32.totalorder %s1301_s20, %s1301_s20 }
 0x5aa   : > { %p2100_p11 = scmp.ne.s32.totalorder %s1301_s20, %s2099_s25  ;;  %p2107_p9 = scmp.lt.s32.totalorder %s2099_s25, %s2099_s25 }
 0x5ac   : > { %p2101_p0 = pnand %p2100_p11, %p1830_p12  ;;  %p2108_p2 = por %p2107_p9, %p2106_p1 }
 0x5ae   : > { %p2102_p5 = pneg %p2101_p0 }
 0x5b0   : > { %p2109_p3 = pnand %p2108_p2, %p2102_p5 }
 0x5b2   : > { %2112 = shalt.err (!%p2109_p3)
}
 0x5b3   : > { %s2752_s4 = sld [smem:[#allocation34_spill]] }
 0x5b9   : > { %1788 = dma.vmem_to_hbm [thread:$0]  (%p1830_p12), %s1301_s20, 128, %s2752_s4, [#allocation6]  }
 0x5ba   : > { %2160 = dma.done.wait (%p1830_p12), [#allocation6], 128  }
 0x5bb   : > { %2162 = vsyncadd (%p1830_p12), [#allocation6], 4294967168 }
 0x5bc PF: > { %s2753_s21 = sld [smem:[#allocation26_spill]]  ;;  %s2756_s18 = smov %s2169_s19 }
 0x5bd   : > { %s2754_s0 = sld [smem:[#allocation25_spill]] }
 0x5be   : > { %s2755_s20 = sld [smem:[#allocation27_spill]] }
 0x5c2   : > { %p30_p6 = scmp.ge.s32.totalorder %s2753_s21, 4  }
 0x5c3   : > { %s2757_s19 = smov %s2754_s0 }
 0x5c4   :  { %32 = sbr.rel (!%p30_p6) target bundleno = 16 (0x10), region = 173 }
 0x5c9   :  { %1313 = vsyncpa [#allocation5], 1 }
 0x5ca   :  { %1315 = vsyncpa [#allocation5 + $0x1], 1 }
 0x5cb   :  { %1316 = vsyncpa [#allocation8], 1 }
 0x5cc   :  { %1317 = vsyncpa [#allocation11], 1 }
 0x5cd   :  { %1318 = vsyncpa [#allocation14], 1 }
 0x5ce   :  { %1320 = vsyncpa [#allocation14 + $0x1], 1 }
 0x5cf   :  { %1321 = vsyncpa [#allocation17], 1 }
 0x5d0   :  { %1322 = vsyncpa [#allocation6], 1 }
 0x5d1   :  { %1324 = vsyncpa [#allocation6 + $0x1], 1 }

</bundles_post_ra>
